<compile_context>
chip_gen: v7x
topology: tpu7x:2x2x1
jax: 0.10.0
libtpu: 0.0.40
codegen_flags: <defaults>
</compile_context>

<pallas_src>
import jax
import jax.numpy as jnp
from jax import lax
from jax.experimental import pallas as pl
from jax.experimental.pallas import tpu as pltpu

# ---- small deterministic config (same as previous version) ----
VOCAB = 100          # word vocabulary size
POS_VOCAB = 20       # POS tag vocabulary size
WORD_EMB = 32        # word embedding dim
POS_EMB = 16         # POS embedding dim
EMB = WORD_EMB + POS_EMB   # LSTM input size = 48
HID = 32             # per-direction LSTM hidden size (4*HID = 128 lanes)
MLP_D = 64           # logical edge-scorer MLP hidden size
MLP_DP = 128         # lane-padded MLP width used inside the kernel
SEQ = 8              # sentence length


# ---------------- fused Pallas kernel ----------------
def parser_kernel(b_out_ref,                                    # SMEM (1,) f32
                  word_idx_ref, pos_idx_ref,                    # VMEM (n,1) i32
                  word_emb_ref, pos_emb_ref,                    # embedding tables
                  w_ih_ref, b_fb_ref, w_hh_f_ref, w_hh_b_ref,   # BiLSTM params
                  w_head_ref, w_mod_ref, b_mlp_ref, w_out_ref,  # edge-MLP params
                  scores_ref,                                   # out [n, n]
                  feat_sc):                                     # VMEM [n, 2*HID]
    n = scores_ref.shape[0]
    H4 = 4 * HID

    # ---- 1) embedding lookup fused in-kernel (exact one-hot matmul on MXU) ----
    w_oh = (lax.broadcasted_iota(jnp.int32, (n, VOCAB), 1)
            == word_idx_ref[...]).astype(jnp.float32)            # [n, VOCAB]
    p_oh = (lax.broadcasted_iota(jnp.int32, (n, POS_VOCAB), 1)
            == pos_idx_ref[...]).astype(jnp.float32)             # [n, POS_VOCAB]
    w_rows = jnp.dot(w_oh, word_emb_ref[...],
                     preferred_element_type=jnp.float32)         # [n, WORD_EMB]
    p_rows = jnp.dot(p_oh, pos_emb_ref[...],
                     preferred_element_type=jnp.float32)         # [n, POS_EMB]

    # ---- 2) hoisted input projection, both directions at once, bias folded ----
    # Equivalent to  x = [w_rows | p_rows];  xw = x @ W_ih_fb + b_fb
    xw = (jnp.dot(w_rows, w_ih_ref[0:WORD_EMB, :],
                  preferred_element_type=jnp.float32)
          + jnp.dot(p_rows, w_ih_ref[WORD_EMB:EMB, :],
                    preferred_element_type=jnp.float32)
          + b_fb_ref[...])                                       # [n, 8*HID]

    # ---- 3) BiLSTM recurrence: fwd + bwd in one fully-unrolled loop ----
    w_hh_f = w_hh_f_ref[...]                                     # [HID, 4*HID]
    w_hh_b = w_hh_b_ref[...]

    def cell(xw_row, h, c, w_hh):
        gates = xw_row + jnp.dot(h, w_hh,
                                 preferred_element_type=jnp.float32)  # [1, 4H]
        i_g = jax.nn.sigmoid(gates[:, 0 * HID:1 * HID])
        f_g = jax.nn.sigmoid(gates[:, 1 * HID:2 * HID])
        g_g = jnp.tanh(gates[:, 2 * HID:3 * HID])
        o_g = jax.nn.sigmoid(gates[:, 3 * HID:4 * HID])
        c_new = f_g * c + i_g * g_g
        h_new = o_g * jnp.tanh(c_new)
        return h_new, c_new

    h_f = jnp.zeros((1, HID), jnp.float32)
    c_f = jnp.zeros((1, HID), jnp.float32)
    h_b = jnp.zeros((1, HID), jnp.float32)
    c_b = jnp.zeros((1, HID), jnp.float32)
    for t in range(n):                       # SEQ=8 static -> fully unrolled
        tb = n - 1 - t                       # backward direction, in-kernel
        h_f, c_f = cell(xw[t:t + 1, 0:H4], h_f, c_f, w_hh_f)
        h_b, c_b = cell(xw[tb:tb + 1, H4:2 * H4], h_b, c_b, w_hh_b)
        feat_sc[pl.ds(t, 1), 0:HID] = h_f
        feat_sc[pl.ds(tb, 1), HID:2 * HID] = h_b

    # ---- 4) pairwise MLP edge scorer (lane-padded to MLP_DP = 128) ----
    feat = feat_sc[...]                                          # [n, 2*HID]
    head = jnp.dot(feat, w_head_ref[...],
                   preferred_element_type=jnp.float32)           # [n, DP]
    mod = jnp.dot(feat, w_mod_ref[...],
                  preferred_element_type=jnp.float32)            # [n, DP]
    # score[h, m] = w_out . tanh(head[h] + mod[m] + b_mlp) + b_out
    pair = jnp.tanh(head[:, None, :] + mod[None, :, :]
                    + b_mlp_ref[...][None, :, :])                # [n, n, DP]
    scores = jnp.sum(pair * w_out_ref[...][None, :, :], axis=-1)  # [n, n]
    scores_ref[...] = scores + b_out_ref[0]


def _pad_cols(a, cols):
    return jnp.pad(a, ((0, 0), (0, cols - a.shape[1])))


# ---------------- Module-equivalent wrapper ----------------
class KiperwasserDependencyParserPallas:
    def __init__(self, key):
        ks = jax.random.split(key, 14)
        s = 0.1

        def init(k, shape):
            return jax.random.normal(k, shape, jnp.float32) * s

        # logical parameters (identical layout/semantics to previous version)
        self.word_emb = init(ks[0], (VOCAB, WORD_EMB))
        self.pos_emb = init(ks[1], (POS_VOCAB, POS_EMB))
        self.w_ih_f = init(ks[2], (EMB, 4 * HID))
        self.w_hh_f = init(ks[3], (HID, 4 * HID))
        self.b_f = init(ks[4], (1, 4 * HID))
        self.w_ih_b = init(ks[5], (EMB, 4 * HID))
        self.w_hh_b = init(ks[6], (HID, 4 * HID))
        self.b_b = init(ks[7], (1, 4 * HID))
        self.w_head = init(ks[8], (2 * HID, MLP_D))
        self.w_mod = init(ks[9], (2 * HID, MLP_D))
        self.b_mlp = init(ks[10], (1, MLP_D))
        self.w_out = init(ks[11], (1, MLP_D))
        self.b_out = init(ks[12], (1, 1))

        # --- precomputed fused / lane-padded kernel operands ---
        # both directions' input projections concatenated along N (48 x 256)
        self.w_ih_fb = jnp.concatenate([self.w_ih_f, self.w_ih_b], axis=1)
        self.b_fb = jnp.concatenate([self.b_f, self.b_b], axis=1)   # (1, 256)
        # zero-pad MLP width 64 -> 128 (semantically inert)
        self.w_head_p = _pad_cols(self.w_head, MLP_DP)
        self.w_mod_p = _pad_cols(self.w_mod, MLP_DP)
        self.b_mlp_p = _pad_cols(self.b_mlp, MLP_DP)
        self.w_out_p = _pad_cols(self.w_out, MLP_DP)
        self.b_out_s = self.b_out.reshape((1,))

    def forward(self, sentence):
        word_idx_tensor, pos_idx_tensor, true_tree_heads = sentence
        del true_tree_heads
        # TODO(synk): reference hw2 forward additionally computes NLL loss vs
        # true_tree_heads and Chu-Liu-Edmonds decoding at eval; not a kernel op.
        word_idx = word_idx_tensor[0].astype(jnp.int32)[:, None]   # (n, 1)
        pos_idx = pos_idx_tensor[0].astype(jnp.int32)[:, None]     # (n, 1)
        n = word_idx.shape[0]

        smem = pl.BlockSpec(memory_space=pltpu.MemorySpace.SMEM)
        vmem = pl.BlockSpec(memory_space=pltpu.MemorySpace.VMEM)
        return pl.pallas_call(
            parser_kernel,
            out_shape=jax.ShapeDtypeStruct((n, n), jnp.float32),
            in_specs=[smem] + [vmem] * 12,
            out_specs=vmem,
            scratch_shapes=[pltpu.VMEM((n, 2 * HID), jnp.float32)],
        )(self.b_out_s,
          word_idx, pos_idx,
          self.word_emb, self.pos_emb,
          self.w_ih_fb, self.b_fb, self.w_hh_f, self.w_hh_b,
          self.w_head_p, self.w_mod_p, self.b_mlp_p, self.w_out_p)


if __name__ == "__main__":
    key = jax.random.PRNGKey(0)
    k_model, k_w, k_p, k_h = jax.random.split(key, 4)

    parser = KiperwasserDependencyParserPallas(k_model)

    word_idx = jax.random.randint(k_w, (1, SEQ), 0, VOCAB, dtype=jnp.int32)
    pos_idx = jax.random.randint(k_p, (1, SEQ), 0, POS_VOCAB, dtype=jnp.int32)
    true_heads = jax.random.randint(k_h, (1, SEQ), 0, SEQ, dtype=jnp.int32)

    scores = parser.forward((word_idx, pos_idx, true_heads))
    scores = jax.block_until_ready(scores)

    assert scores.shape == (SEQ, SEQ)
    assert scores.dtype == jnp.float32
    assert bool(jnp.all(jnp.isfinite(scores)))
    print("KERNEL_OK")
</pallas_src>

<mosaic_0001>
module attributes {stable_mosaic.version = 11 : i64} {
  func.func @parser_kernel(%arg0: memref<1xf32, #tpu.memory_space<smem>>, %arg1: memref<8x1xi32, #tpu.memory_space<vmem>>, %arg2: memref<8x1xi32, #tpu.memory_space<vmem>>, %arg3: memref<100x32xf32, #tpu.memory_space<vmem>>, %arg4: memref<20x16xf32, #tpu.memory_space<vmem>>, %arg5: memref<48x256xf32, #tpu.memory_space<vmem>>, %arg6: memref<1x256xf32, #tpu.memory_space<vmem>>, %arg7: memref<32x128xf32, #tpu.memory_space<vmem>>, %arg8: memref<32x128xf32, #tpu.memory_space<vmem>>, %arg9: memref<64x128xf32, #tpu.memory_space<vmem>>, %arg10: memref<64x128xf32, #tpu.memory_space<vmem>>, %arg11: memref<1x128xf32, #tpu.memory_space<vmem>>, %arg12: memref<1x128xf32, #tpu.memory_space<vmem>>, %arg13: memref<8x8xf32, #tpu.memory_space<vmem>>, %arg14: memref<8x64xf32, #tpu.memory_space<vmem>>) attributes {dimension_semantics = [], scalar_prefetch = 0 : i64, scratch_operands = 1 : i64, tpu.core_type = #tpu.core_type<tc>} {
    %0 = tpu.iota {dimensions = array<i32: 1>} : vector<8x100xi32>
    %c0 = arith.constant 0 : index
    %c0_0 = arith.constant 0 : index
    %1 = vector.load %arg1[%c0, %c0_0] : memref<8x1xi32, #tpu.memory_space<vmem>>, vector<8x1xi32>
    %2 = vector.broadcast %1 : vector<8x1xi32> to vector<8x100xi32>
    %3 = arith.cmpi eq, %0, %2 : vector<8x100xi32>
    %4 = arith.extui %3 : vector<8x100xi1> to vector<8x100xi32>
    %5 = arith.sitofp %4 : vector<8x100xi32> to vector<8x100xf32>
    %6 = tpu.iota {dimensions = array<i32: 1>} : vector<8x20xi32>
    %c0_1 = arith.constant 0 : index
    %c0_2 = arith.constant 0 : index
    %7 = vector.load %arg2[%c0_1, %c0_2] : memref<8x1xi32, #tpu.memory_space<vmem>>, vector<8x1xi32>
    %8 = vector.broadcast %7 : vector<8x1xi32> to vector<8x20xi32>
    %9 = arith.cmpi eq, %6, %8 : vector<8x20xi32>
    %10 = arith.extui %9 : vector<8x20xi1> to vector<8x20xi32>
    %11 = arith.sitofp %10 : vector<8x20xi32> to vector<8x20xf32>
    %c0_3 = arith.constant 0 : index
    %c0_4 = arith.constant 0 : index
    %12 = vector.load %arg3[%c0_3, %c0_4] : memref<100x32xf32, #tpu.memory_space<vmem>>, vector<100x32xf32>
    %cst = arith.constant dense<0.000000e+00> : vector<8x32xf32>
    %13 = tpu.matmul %5, %12, %cst {dimension_numbers = #tpu.dot_dimension_numbers<[1], [0], [0], [1], [0, 0, 1, 1], [], []>} : vector<8x100xf32>, vector<100x32xf32>, vector<8x32xf32> -> vector<8x32xf32>
    %c0_5 = arith.constant 0 : index
    %c0_6 = arith.constant 0 : index
    %14 = vector.load %arg4[%c0_5, %c0_6] : memref<20x16xf32, #tpu.memory_space<vmem>>, vector<20x16xf32>
    %cst_7 = arith.constant dense<0.000000e+00> : vector<8x16xf32>
    %15 = tpu.matmul %11, %14, %cst_7 {dimension_numbers = #tpu.dot_dimension_numbers<[1], [0], [0], [1], [0, 0, 1, 1], [], []>} : vector<8x20xf32>, vector<20x16xf32>, vector<8x16xf32> -> vector<8x16xf32>
    %c0_8 = arith.constant 0 : index
    %c0_9 = arith.constant 0 : index
    %16 = vector.load %arg5[%c0_8, %c0_9] : memref<48x256xf32, #tpu.memory_space<vmem>>, vector<32x256xf32>
    %cst_10 = arith.constant dense<0.000000e+00> : vector<8x256xf32>
    %17 = tpu.matmul %13, %16, %cst_10 {dimension_numbers = #tpu.dot_dimension_numbers<[1], [0], [0], [1], [0, 0, 1, 1], [], []>} : vector<8x32xf32>, vector<32x256xf32>, vector<8x256xf32> -> vector<8x256xf32>
    %c32 = arith.constant 32 : index
    %c0_11 = arith.constant 0 : index
    %18 = vector.load %arg5[%c32, %c0_11] : memref<48x256xf32, #tpu.memory_space<vmem>>, vector<16x256xf32>
    %cst_12 = arith.constant dense<0.000000e+00> : vector<8x256xf32>
    %19 = tpu.matmul %15, %18, %cst_12 {dimension_numbers = #tpu.dot_dimension_numbers<[1], [0], [0], [1], [0, 0, 1, 1], [], []>} : vector<8x16xf32>, vector<16x256xf32>, vector<8x256xf32> -> vector<8x256xf32>
    %20 = arith.addf %17, %19 : vector<8x256xf32>
    %c0_13 = arith.constant 0 : index
    %c0_14 = arith.constant 0 : index
    %21 = vector.load %arg6[%c0_13, %c0_14] : memref<1x256xf32, #tpu.memory_space<vmem>>, vector<1x256xf32>
    %22 = vector.broadcast %21 : vector<1x256xf32> to vector<8x256xf32>
    %23 = arith.addf %20, %22 : vector<8x256xf32>
    %c0_15 = arith.constant 0 : index
    %c0_16 = arith.constant 0 : index
    %24 = vector.load %arg7[%c0_15, %c0_16] : memref<32x128xf32, #tpu.memory_space<vmem>>, vector<32x128xf32>
    %c0_17 = arith.constant 0 : index
    %c0_18 = arith.constant 0 : index
    %25 = vector.load %arg8[%c0_17, %c0_18] : memref<32x128xf32, #tpu.memory_space<vmem>>, vector<32x128xf32>
    %cst_19 = arith.constant 0.000000e+00 : f32
    %26 = vector.broadcast %cst_19 : f32 to vector<1x32xf32>
    %cst_20 = arith.constant 0.000000e+00 : f32
    %27 = vector.broadcast %cst_20 : f32 to vector<1x32xf32>
    %cst_21 = arith.constant 0.000000e+00 : f32
    %28 = vector.broadcast %cst_21 : f32 to vector<1x32xf32>
    %cst_22 = arith.constant 0.000000e+00 : f32
    %29 = vector.broadcast %cst_22 : f32 to vector<1x32xf32>
    %30 = vector.extract_strided_slice %23 {offsets = [0, 0], sizes = [1, 128], strides = [1, 1]} : vector<8x256xf32> to vector<1x128xf32>
    %cst_23 = arith.constant dense<0.000000e+00> : vector<1x128xf32>
    %31 = tpu.matmul %26, %24, %cst_23 {dimension_numbers = #tpu.dot_dimension_numbers<[1], [0], [0], [1], [0, 0, 1, 1], [], []>} : vector<1x32xf32>, vector<32x128xf32>, vector<1x128xf32> -> vector<1x128xf32>
    %32 = arith.addf %30, %31 : vector<1x128xf32>
    %33 = vector.extract_strided_slice %32 {offsets = [0, 0], sizes = [1, 32], strides = [1, 1]} : vector<1x128xf32> to vector<1x32xf32>
    %34 = arith.negf %33 : vector<1x32xf32>
    %35 = math.exp %34 : vector<1x32xf32>
    %cst_24 = arith.constant 1.000000e+00 : f32
    %36 = vector.broadcast %cst_24 : f32 to vector<1x32xf32>
    %37 = arith.addf %36, %35 : vector<1x32xf32>
    %38 = arith.divf %36, %37 : vector<1x32xf32>
    %39 = vector.extract_strided_slice %32 {offsets = [0, 32], sizes = [1, 32], strides = [1, 1]} : vector<1x128xf32> to vector<1x32xf32>
    %40 = arith.negf %39 : vector<1x32xf32>
    %41 = math.exp %40 : vector<1x32xf32>
    %cst_25 = arith.constant 1.000000e+00 : f32
    %42 = vector.broadcast %cst_25 : f32 to vector<1x32xf32>
    %43 = arith.addf %42, %41 : vector<1x32xf32>
    %44 = arith.divf %42, %43 : vector<1x32xf32>
    %45 = vector.extract_strided_slice %32 {offsets = [0, 64], sizes = [1, 32], strides = [1, 1]} : vector<1x128xf32> to vector<1x32xf32>
    %46 = math.tanh %45 : vector<1x32xf32>
    %47 = vector.extract_strided_slice %32 {offsets = [0, 96], sizes = [1, 32], strides = [1, 1]} : vector<1x128xf32> to vector<1x32xf32>
    %48 = arith.negf %47 : vector<1x32xf32>
    %49 = math.exp %48 : vector<1x32xf32>
    %cst_26 = arith.constant 1.000000e+00 : f32
    %50 = vector.broadcast %cst_26 : f32 to vector<1x32xf32>
    %51 = arith.addf %50, %49 : vector<1x32xf32>
    %52 = arith.divf %50, %51 : vector<1x32xf32>
    %53 = arith.mulf %44, %27 : vector<1x32xf32>
    %54 = arith.mulf %38, %46 : vector<1x32xf32>
    %55 = arith.addf %53, %54 : vector<1x32xf32>
    %56 = math.tanh %55 : vector<1x32xf32>
    %57 = arith.mulf %52, %56 : vector<1x32xf32>
    %58 = vector.extract_strided_slice %23 {offsets = [7, 128], sizes = [1, 128], strides = [1, 1]} : vector<8x256xf32> to vector<1x128xf32>
    %cst_27 = arith.constant dense<0.000000e+00> : vector<1x128xf32>
    %59 = tpu.matmul %28, %25, %cst_27 {dimension_numbers = #tpu.dot_dimension_numbers<[1], [0], [0], [1], [0, 0, 1, 1], [], []>} : vector<1x32xf32>, vector<32x128xf32>, vector<1x128xf32> -> vector<1x128xf32>
    %60 = arith.addf %58, %59 : vector<1x128xf32>
    %61 = vector.extract_strided_slice %60 {offsets = [0, 0], sizes = [1, 32], strides = [1, 1]} : vector<1x128xf32> to vector<1x32xf32>
    %62 = arith.negf %61 : vector<1x32xf32>
    %63 = math.exp %62 : vector<1x32xf32>
    %cst_28 = arith.constant 1.000000e+00 : f32
    %64 = vector.broadcast %cst_28 : f32 to vector<1x32xf32>
    %65 = arith.addf %64, %63 : vector<1x32xf32>
    %66 = arith.divf %64, %65 : vector<1x32xf32>
    %67 = vector.extract_strided_slice %60 {offsets = [0, 32], sizes = [1, 32], strides = [1, 1]} : vector<1x128xf32> to vector<1x32xf32>
    %68 = arith.negf %67 : vector<1x32xf32>
    %69 = math.exp %68 : vector<1x32xf32>
    %cst_29 = arith.constant 1.000000e+00 : f32
    %70 = vector.broadcast %cst_29 : f32 to vector<1x32xf32>
    %71 = arith.addf %70, %69 : vector<1x32xf32>
    %72 = arith.divf %70, %71 : vector<1x32xf32>
    %73 = vector.extract_strided_slice %60 {offsets = [0, 64], sizes = [1, 32], strides = [1, 1]} : vector<1x128xf32> to vector<1x32xf32>
    %74 = math.tanh %73 : vector<1x32xf32>
    %75 = vector.extract_strided_slice %60 {offsets = [0, 96], sizes = [1, 32], strides = [1, 1]} : vector<1x128xf32> to vector<1x32xf32>
    %76 = arith.negf %75 : vector<1x32xf32>
    %77 = math.exp %76 : vector<1x32xf32>
    %cst_30 = arith.constant 1.000000e+00 : f32
    %78 = vector.broadcast %cst_30 : f32 to vector<1x32xf32>
    %79 = arith.addf %78, %77 : vector<1x32xf32>
    %80 = arith.divf %78, %79 : vector<1x32xf32>
    %81 = arith.mulf %72, %29 : vector<1x32xf32>
    %82 = arith.mulf %66, %74 : vector<1x32xf32>
    %83 = arith.addf %81, %82 : vector<1x32xf32>
    %84 = math.tanh %83 : vector<1x32xf32>
    %85 = arith.mulf %80, %84 : vector<1x32xf32>
    %c0_31 = arith.constant 0 : index
    %c0_32 = arith.constant 0 : index
    %86 = vector.load %arg14[%c0_31, %c0_32] : memref<8x64xf32, #tpu.memory_space<vmem>>, vector<1x32xf32>
    tpu.vector_store %arg14[%c0_31, %c0_32], %57 {strides = array<i32>} : memref<8x64xf32, #tpu.memory_space<vmem>>, vector<1x32xf32>,
    %c7 = arith.constant 7 : index
    %c32_33 = arith.constant 32 : index
    %87 = vector.load %arg14[%c7, %c32_33] : memref<8x64xf32, #tpu.memory_space<vmem>>, vector<1x32xf32>
    tpu.vector_store %arg14[%c7, %c32_33], %85 {strides = array<i32>} : memref<8x64xf32, #tpu.memory_space<vmem>>, vector<1x32xf32>,
    %88 = vector.extract_strided_slice %23 {offsets = [1, 0], sizes = [1, 128], strides = [1, 1]} : vector<8x256xf32> to vector<1x128xf32>
    %cst_34 = arith.constant dense<0.000000e+00> : vector<1x128xf32>
    %89 = tpu.matmul %57, %24, %cst_34 {dimension_numbers = #tpu.dot_dimension_numbers<[1], [0], [0], [1], [0, 0, 1, 1], [], []>} : vector<1x32xf32>, vector<32x128xf32>, vector<1x128xf32> -> vector<1x128xf32>
    %90 = arith.addf %88, %89 : vector<1x128xf32>
    %91 = vector.extract_strided_slice %90 {offsets = [0, 0], sizes = [1, 32], strides = [1, 1]} : vector<1x128xf32> to vector<1x32xf32>
    %92 = arith.negf %91 : vector<1x32xf32>
    %93 = math.exp %92 : vector<1x32xf32>
    %cst_35 = arith.constant 1.000000e+00 : f32
    %94 = vector.broadcast %cst_35 : f32 to vector<1x32xf32>
    %95 = arith.addf %94, %93 : vector<1x32xf32>
    %96 = arith.divf %94, %95 : vector<1x32xf32>
    %97 = vector.extract_strided_slice %90 {offsets = [0, 32], sizes = [1, 32], strides = [1, 1]} : vector<1x128xf32> to vector<1x32xf32>
    %98 = arith.negf %97 : vector<1x32xf32>
    %99 = math.exp %98 : vector<1x32xf32>
    %cst_36 = arith.constant 1.000000e+00 : f32
    %100 = vector.broadcast %cst_36 : f32 to vector<1x32xf32>
    %101 = arith.addf %100, %99 : vector<1x32xf32>
    %102 = arith.divf %100, %101 : vector<1x32xf32>
    %103 = vector.extract_strided_slice %90 {offsets = [0, 64], sizes = [1, 32], strides = [1, 1]} : vector<1x128xf32> to vector<1x32xf32>
    %104 = math.tanh %103 : vector<1x32xf32>
    %105 = vector.extract_strided_slice %90 {offsets = [0, 96], sizes = [1, 32], strides = [1, 1]} : vector<1x128xf32> to vector<1x32xf32>
    %106 = arith.negf %105 : vector<1x32xf32>
    %107 = math.exp %106 : vector<1x32xf32>
    %cst_37 = arith.constant 1.000000e+00 : f32
    %108 = vector.broadcast %cst_37 : f32 to vector<1x32xf32>
    %109 = arith.addf %108, %107 : vector<1x32xf32>
    %110 = arith.divf %108, %109 : vector<1x32xf32>
    %111 = arith.mulf %102, %55 : vector<1x32xf32>
    %112 = arith.mulf %96, %104 : vector<1x32xf32>
    %113 = arith.addf %111, %112 : vector<1x32xf32>
    %114 = math.tanh %113 : vector<1x32xf32>
    %115 = arith.mulf %110, %114 : vector<1x32xf32>
    %116 = vector.extract_strided_slice %23 {offsets = [6, 128], sizes = [1, 128], strides = [1, 1]} : vector<8x256xf32> to vector<1x128xf32>
    %cst_38 = arith.constant dense<0.000000e+00> : vector<1x128xf32>
    %117 = tpu.matmul %85, %25, %cst_38 {dimension_numbers = #tpu.dot_dimension_numbers<[1], [0], [0], [1], [0, 0, 1, 1], [], []>} : vector<1x32xf32>, vector<32x128xf32>, vector<1x128xf32> -> vector<1x128xf32>
    %118 = arith.addf %116, %117 : vector<1x128xf32>
    %119 = vector.extract_strided_slice %118 {offsets = [0, 0], sizes = [1, 32], strides = [1, 1]} : vector<1x128xf32> to vector<1x32xf32>
    %120 = arith.negf %119 : vector<1x32xf32>
    %121 = math.exp %120 : vector<1x32xf32>
    %cst_39 = arith.constant 1.000000e+00 : f32
    %122 = vector.broadcast %cst_39 : f32 to vector<1x32xf32>
    %123 = arith.addf %122, %121 : vector<1x32xf32>
    %124 = arith.divf %122, %123 : vector<1x32xf32>
    %125 = vector.extract_strided_slice %118 {offsets = [0, 32], sizes = [1, 32], strides = [1, 1]} : vector<1x128xf32> to vector<1x32xf32>
    %126 = arith.negf %125 : vector<1x32xf32>
    %127 = math.exp %126 : vector<1x32xf32>
    %cst_40 = arith.constant 1.000000e+00 : f32
    %128 = vector.broadcast %cst_40 : f32 to vector<1x32xf32>
    %129 = arith.addf %128, %127 : vector<1x32xf32>
    %130 = arith.divf %128, %129 : vector<1x32xf32>
    %131 = vector.extract_strided_slice %118 {offsets = [0, 64], sizes = [1, 32], strides = [1, 1]} : vector<1x128xf32> to vector<1x32xf32>
    %132 = math.tanh %131 : vector<1x32xf32>
    %133 = vector.extract_strided_slice %118 {offsets = [0, 96], sizes = [1, 32], strides = [1, 1]} : vector<1x128xf32> to vector<1x32xf32>
    %134 = arith.negf %133 : vector<1x32xf32>
    %135 = math.exp %134 : vector<1x32xf32>
    %cst_41 = arith.constant 1.000000e+00 : f32
    %136 = vector.broadcast %cst_41 : f32 to vector<1x32xf32>
    %137 = arith.addf %136, %135 : vector<1x32xf32>
    %138 = arith.divf %136, %137 : vector<1x32xf32>
    %139 = arith.mulf %130, %83 : vector<1x32xf32>
    %140 = arith.mulf %124, %132 : vector<1x32xf32>
    %141 = arith.addf %139, %140 : vector<1x32xf32>
    %142 = math.tanh %141 : vector<1x32xf32>
    %143 = arith.mulf %138, %142 : vector<1x32xf32>
    %c1 = arith.constant 1 : index
    %c0_42 = arith.constant 0 : index
    %144 = vector.load %arg14[%c1, %c0_42] : memref<8x64xf32, #tpu.memory_space<vmem>>, vector<1x32xf32>
    tpu.vector_store %arg14[%c1, %c0_42], %115 {strides = array<i32>} : memref<8x64xf32, #tpu.memory_space<vmem>>, vector<1x32xf32>,
    %c6 = arith.constant 6 : index
    %c32_43 = arith.constant 32 : index
    %145 = vector.load %arg14[%c6, %c32_43] : memref<8x64xf32, #tpu.memory_space<vmem>>, vector<1x32xf32>
    tpu.vector_store %arg14[%c6, %c32_43], %143 {strides = array<i32>} : memref<8x64xf32, #tpu.memory_space<vmem>>, vector<1x32xf32>,
    %146 = vector.extract_strided_slice %23 {offsets = [2, 0], sizes = [1, 128], strides = [1, 1]} : vector<8x256xf32> to vector<1x128xf32>
    %cst_44 = arith.constant dense<0.000000e+00> : vector<1x128xf32>
    %147 = tpu.matmul %115, %24, %cst_44 {dimension_numbers = #tpu.dot_dimension_numbers<[1], [0], [0], [1], [0, 0, 1, 1], [], []>} : vector<1x32xf32>, vector<32x128xf32>, vector<1x128xf32> -> vector<1x128xf32>
    %148 = arith.addf %146, %147 : vector<1x128xf32>
    %149 = vector.extract_strided_slice %148 {offsets = [0, 0], sizes = [1, 32], strides = [1, 1]} : vector<1x128xf32> to vector<1x32xf32>
    %150 = arith.negf %149 : vector<1x32xf32>
    %151 = math.exp %150 : vector<1x32xf32>
    %cst_45 = arith.constant 1.000000e+00 : f32
    %152 = vector.broadcast %cst_45 : f32 to vector<1x32xf32>
    %153 = arith.addf %152, %151 : vector<1x32xf32>
    %154 = arith.divf %152, %153 : vector<1x32xf32>
    %155 = vector.extract_strided_slice %148 {offsets = [0, 32], sizes = [1, 32], strides = [1, 1]} : vector<1x128xf32> to vector<1x32xf32>
    %156 = arith.negf %155 : vector<1x32xf32>
    %157 = math.exp %156 : vector<1x32xf32>
    %cst_46 = arith.constant 1.000000e+00 : f32
    %158 = vector.broadcast %cst_46 : f32 to vector<1x32xf32>
    %159 = arith.addf %158, %157 : vector<1x32xf32>
    %160 = arith.divf %158, %159 : vector<1x32xf32>
    %161 = vector.extract_strided_slice %148 {offsets = [0, 64], sizes = [1, 32], strides = [1, 1]} : vector<1x128xf32> to vector<1x32xf32>
    %162 = math.tanh %161 : vector<1x32xf32>
    %163 = vector.extract_strided_slice %148 {offsets = [0, 96], sizes = [1, 32], strides = [1, 1]} : vector<1x128xf32> to vector<1x32xf32>
    %164 = arith.negf %163 : vector<1x32xf32>
    %165 = math.exp %164 : vector<1x32xf32>
    %cst_47 = arith.constant 1.000000e+00 : f32
    %166 = vector.broadcast %cst_47 : f32 to vector<1x32xf32>
    %167 = arith.addf %166, %165 : vector<1x32xf32>
    %168 = arith.divf %166, %167 : vector<1x32xf32>
    %169 = arith.mulf %160, %113 : vector<1x32xf32>
    %170 = arith.mulf %154, %162 : vector<1x32xf32>
    %171 = arith.addf %169, %170 : vector<1x32xf32>
    %172 = math.tanh %171 : vector<1x32xf32>
    %173 = arith.mulf %168, %172 : vector<1x32xf32>
    %174 = vector.extract_strided_slice %23 {offsets = [5, 128], sizes = [1, 128], strides = [1, 1]} : vector<8x256xf32> to vector<1x128xf32>
    %cst_48 = arith.constant dense<0.000000e+00> : vector<1x128xf32>
    %175 = tpu.matmul %143, %25, %cst_48 {dimension_numbers = #tpu.dot_dimension_numbers<[1], [0], [0], [1], [0, 0, 1, 1], [], []>} : vector<1x32xf32>, vector<32x128xf32>, vector<1x128xf32> -> vector<1x128xf32>
    %176 = arith.addf %174, %175 : vector<1x128xf32>
    %177 = vector.extract_strided_slice %176 {offsets = [0, 0], sizes = [1, 32], strides = [1, 1]} : vector<1x128xf32> to vector<1x32xf32>
    %178 = arith.negf %177 : vector<1x32xf32>
    %179 = math.exp %178 : vector<1x32xf32>
    %cst_49 = arith.constant 1.000000e+00 : f32
    %180 = vector.broadcast %cst_49 : f32 to vector<1x32xf32>
    %181 = arith.addf %180, %179 : vector<1x32xf32>
    %182 = arith.divf %180, %181 : vector<1x32xf32>
    %183 = vector.extract_strided_slice %176 {offsets = [0, 32], sizes = [1, 32], strides = [1, 1]} : vector<1x128xf32> to vector<1x32xf32>
    %184 = arith.negf %183 : vector<1x32xf32>
    %185 = math.exp %184 : vector<1x32xf32>
    %cst_50 = arith.constant 1.000000e+00 : f32
    %186 = vector.broadcast %cst_50 : f32 to vector<1x32xf32>
    %187 = arith.addf %186, %185 : vector<1x32xf32>
    %188 = arith.divf %186, %187 : vector<1x32xf32>
    %189 = vector.extract_strided_slice %176 {offsets = [0, 64], sizes = [1, 32], strides = [1, 1]} : vector<1x128xf32> to vector<1x32xf32>
    %190 = math.tanh %189 : vector<1x32xf32>
    %191 = vector.extract_strided_slice %176 {offsets = [0, 96], sizes = [1, 32], strides = [1, 1]} : vector<1x128xf32> to vector<1x32xf32>
    %192 = arith.negf %191 : vector<1x32xf32>
    %193 = math.exp %192 : vector<1x32xf32>
    %cst_51 = arith.constant 1.000000e+00 : f32
    %194 = vector.broadcast %cst_51 : f32 to vector<1x32xf32>
    %195 = arith.addf %194, %193 : vector<1x32xf32>
    %196 = arith.divf %194, %195 : vector<1x32xf32>
    %197 = arith.mulf %188, %141 : vector<1x32xf32>
    %198 = arith.mulf %182, %190 : vector<1x32xf32>
    %199 = arith.addf %197, %198 : vector<1x32xf32>
    %200 = math.tanh %199 : vector<1x32xf32>
    %201 = arith.mulf %196, %200 : vector<1x32xf32>
    %c2 = arith.constant 2 : index
    %c0_52 = arith.constant 0 : index
    %202 = vector.load %arg14[%c2, %c0_52] : memref<8x64xf32, #tpu.memory_space<vmem>>, vector<1x32xf32>
    tpu.vector_store %arg14[%c2, %c0_52], %173 {strides = array<i32>} : memref<8x64xf32, #tpu.memory_space<vmem>>, vector<1x32xf32>,
    %c5 = arith.constant 5 : index
    %c32_53 = arith.constant 32 : index
    %203 = vector.load %arg14[%c5, %c32_53] : memref<8x64xf32, #tpu.memory_space<vmem>>, vector<1x32xf32>
    tpu.vector_store %arg14[%c5, %c32_53], %201 {strides = array<i32>} : memref<8x64xf32, #tpu.memory_space<vmem>>, vector<1x32xf32>,
    %204 = vector.extract_strided_slice %23 {offsets = [3, 0], sizes = [1, 128], strides = [1, 1]} : vector<8x256xf32> to vector<1x128xf32>
    %cst_54 = arith.constant dense<0.000000e+00> : vector<1x128xf32>
    %205 = tpu.matmul %173, %24, %cst_54 {dimension_numbers = #tpu.dot_dimension_numbers<[1], [0], [0], [1], [0, 0, 1, 1], [], []>} : vector<1x32xf32>, vector<32x128xf32>, vector<1x128xf32> -> vector<1x128xf32>
    %206 = arith.addf %204, %205 : vector<1x128xf32>
    %207 = vector.extract_strided_slice %206 {offsets = [0, 0], sizes = [1, 32], strides = [1, 1]} : vector<1x128xf32> to vector<1x32xf32>
    %208 = arith.negf %207 : vector<1x32xf32>
    %209 = math.exp %208 : vector<1x32xf32>
    %cst_55 = arith.constant 1.000000e+00 : f32
    %210 = vector.broadcast %cst_55 : f32 to vector<1x32xf32>
    %211 = arith.addf %210, %209 : vector<1x32xf32>
    %212 = arith.divf %210, %211 : vector<1x32xf32>
    %213 = vector.extract_strided_slice %206 {offsets = [0, 32], sizes = [1, 32], strides = [1, 1]} : vector<1x128xf32> to vector<1x32xf32>
    %214 = arith.negf %213 : vector<1x32xf32>
    %215 = math.exp %214 : vector<1x32xf32>
    %cst_56 = arith.constant 1.000000e+00 : f32
    %216 = vector.broadcast %cst_56 : f32 to vector<1x32xf32>
    %217 = arith.addf %216, %215 : vector<1x32xf32>
    %218 = arith.divf %216, %217 : vector<1x32xf32>
    %219 = vector.extract_strided_slice %206 {offsets = [0, 64], sizes = [1, 32], strides = [1, 1]} : vector<1x128xf32> to vector<1x32xf32>
    %220 = math.tanh %219 : vector<1x32xf32>
    %221 = vector.extract_strided_slice %206 {offsets = [0, 96], sizes = [1, 32], strides = [1, 1]} : vector<1x128xf32> to vector<1x32xf32>
    %222 = arith.negf %221 : vector<1x32xf32>
    %223 = math.exp %222 : vector<1x32xf32>
    %cst_57 = arith.constant 1.000000e+00 : f32
    %224 = vector.broadcast %cst_57 : f32 to vector<1x32xf32>
    %225 = arith.addf %224, %223 : vector<1x32xf32>
    %226 = arith.divf %224, %225 : vector<1x32xf32>
    %227 = arith.mulf %218, %171 : vector<1x32xf32>
    %228 = arith.mulf %212, %220 : vector<1x32xf32>
    %229 = arith.addf %227, %228 : vector<1x32xf32>
    %230 = math.tanh %229 : vector<1x32xf32>
    %231 = arith.mulf %226, %230 : vector<1x32xf32>
    %232 = vector.extract_strided_slice %23 {offsets = [4, 128], sizes = [1, 128], strides = [1, 1]} : vector<8x256xf32> to vector<1x128xf32>
    %cst_58 = arith.constant dense<0.000000e+00> : vector<1x128xf32>
    %233 = tpu.matmul %201, %25, %cst_58 {dimension_numbers = #tpu.dot_dimension_numbers<[1], [0], [0], [1], [0, 0, 1, 1], [], []>} : vector<1x32xf32>, vector<32x128xf32>, vector<1x128xf32> -> vector<1x128xf32>
    %234 = arith.addf %232, %233 : vector<1x128xf32>
    %235 = vector.extract_strided_slice %234 {offsets = [0, 0], sizes = [1, 32], strides = [1, 1]} : vector<1x128xf32> to vector<1x32xf32>
    %236 = arith.negf %235 : vector<1x32xf32>
    %237 = math.exp %236 : vector<1x32xf32>
    %cst_59 = arith.constant 1.000000e+00 : f32
    %238 = vector.broadcast %cst_59 : f32 to vector<1x32xf32>
    %239 = arith.addf %238, %237 : vector<1x32xf32>
    %240 = arith.divf %238, %239 : vector<1x32xf32>
    %241 = vector.extract_strided_slice %234 {offsets = [0, 32], sizes = [1, 32], strides = [1, 1]} : vector<1x128xf32> to vector<1x32xf32>
    %242 = arith.negf %241 : vector<1x32xf32>
    %243 = math.exp %242 : vector<1x32xf32>
    %cst_60 = arith.constant 1.000000e+00 : f32
    %244 = vector.broadcast %cst_60 : f32 to vector<1x32xf32>
    %245 = arith.addf %244, %243 : vector<1x32xf32>
    %246 = arith.divf %244, %245 : vector<1x32xf32>
    %247 = vector.extract_strided_slice %234 {offsets = [0, 64], sizes = [1, 32], strides = [1, 1]} : vector<1x128xf32> to vector<1x32xf32>
    %248 = math.tanh %247 : vector<1x32xf32>
    %249 = vector.extract_strided_slice %234 {offsets = [0, 96], sizes = [1, 32], strides = [1, 1]} : vector<1x128xf32> to vector<1x32xf32>
    %250 = arith.negf %249 : vector<1x32xf32>
    %251 = math.exp %250 : vector<1x32xf32>
    %cst_61 = arith.constant 1.000000e+00 : f32
    %252 = vector.broadcast %cst_61 : f32 to vector<1x32xf32>
    %253 = arith.addf %252, %251 : vector<1x32xf32>
    %254 = arith.divf %252, %253 : vector<1x32xf32>
    %255 = arith.mulf %246, %199 : vector<1x32xf32>
    %256 = arith.mulf %240, %248 : vector<1x32xf32>
    %257 = arith.addf %255, %256 : vector<1x32xf32>
    %258 = math.tanh %257 : vector<1x32xf32>
    %259 = arith.mulf %254, %258 : vector<1x32xf32>
    %c3 = arith.constant 3 : index
    %c0_62 = arith.constant 0 : index
    %260 = vector.load %arg14[%c3, %c0_62] : memref<8x64xf32, #tpu.memory_space<vmem>>, vector<1x32xf32>
    tpu.vector_store %arg14[%c3, %c0_62], %231 {strides = array<i32>} : memref<8x64xf32, #tpu.memory_space<vmem>>, vector<1x32xf32>,
    %c4 = arith.constant 4 : index
    %c32_63 = arith.constant 32 : index
    %261 = vector.load %arg14[%c4, %c32_63] : memref<8x64xf32, #tpu.memory_space<vmem>>, vector<1x32xf32>
    tpu.vector_store %arg14[%c4, %c32_63], %259 {strides = array<i32>} : memref<8x64xf32, #tpu.memory_space<vmem>>, vector<1x32xf32>,
    %262 = vector.extract_strided_slice %23 {offsets = [4, 0], sizes = [1, 128], strides = [1, 1]} : vector<8x256xf32> to vector<1x128xf32>
    %cst_64 = arith.constant dense<0.000000e+00> : vector<1x128xf32>
    %263 = tpu.matmul %231, %24, %cst_64 {dimension_numbers = #tpu.dot_dimension_numbers<[1], [0], [0], [1], [0, 0, 1, 1], [], []>} : vector<1x32xf32>, vector<32x128xf32>, vector<1x128xf32> -> vector<1x128xf32>
    %264 = arith.addf %262, %263 : vector<1x128xf32>
    %265 = vector.extract_strided_slice %264 {offsets = [0, 0], sizes = [1, 32], strides = [1, 1]} : vector<1x128xf32> to vector<1x32xf32>
    %266 = arith.negf %265 : vector<1x32xf32>
    %267 = math.exp %266 : vector<1x32xf32>
    %cst_65 = arith.constant 1.000000e+00 : f32
    %268 = vector.broadcast %cst_65 : f32 to vector<1x32xf32>
    %269 = arith.addf %268, %267 : vector<1x32xf32>
    %270 = arith.divf %268, %269 : vector<1x32xf32>
    %271 = vector.extract_strided_slice %264 {offsets = [0, 32], sizes = [1, 32], strides = [1, 1]} : vector<1x128xf32> to vector<1x32xf32>
    %272 = arith.negf %271 : vector<1x32xf32>
    %273 = math.exp %272 : vector<1x32xf32>
    %cst_66 = arith.constant 1.000000e+00 : f32
    %274 = vector.broadcast %cst_66 : f32 to vector<1x32xf32>
    %275 = arith.addf %274, %273 : vector<1x32xf32>
    %276 = arith.divf %274, %275 : vector<1x32xf32>
    %277 = vector.extract_strided_slice %264 {offsets = [0, 64], sizes = [1, 32], strides = [1, 1]} : vector<1x128xf32> to vector<1x32xf32>
    %278 = math.tanh %277 : vector<1x32xf32>
    %279 = vector.extract_strided_slice %264 {offsets = [0, 96], sizes = [1, 32], strides = [1, 1]} : vector<1x128xf32> to vector<1x32xf32>
    %280 = arith.negf %279 : vector<1x32xf32>
    %281 = math.exp %280 : vector<1x32xf32>
    %cst_67 = arith.constant 1.000000e+00 : f32
    %282 = vector.broadcast %cst_67 : f32 to vector<1x32xf32>
    %283 = arith.addf %282, %281 : vector<1x32xf32>
    %284 = arith.divf %282, %283 : vector<1x32xf32>
    %285 = arith.mulf %276, %229 : vector<1x32xf32>
    %286 = arith.mulf %270, %278 : vector<1x32xf32>
    %287 = arith.addf %285, %286 : vector<1x32xf32>
    %288 = math.tanh %287 : vector<1x32xf32>
    %289 = arith.mulf %284, %288 : vector<1x32xf32>
    %290 = vector.extract_strided_slice %23 {offsets = [3, 128], sizes = [1, 128], strides = [1, 1]} : vector<8x256xf32> to vector<1x128xf32>
    %cst_68 = arith.constant dense<0.000000e+00> : vector<1x128xf32>
    %291 = tpu.matmul %259, %25, %cst_68 {dimension_numbers = #tpu.dot_dimension_numbers<[1], [0], [0], [1], [0, 0, 1, 1], [], []>} : vector<1x32xf32>, vector<32x128xf32>, vector<1x128xf32> -> vector<1x128xf32>
    %292 = arith.addf %290, %291 : vector<1x128xf32>
    %293 = vector.extract_strided_slice %292 {offsets = [0, 0], sizes = [1, 32], strides = [1, 1]} : vector<1x128xf32> to vector<1x32xf32>
    %294 = arith.negf %293 : vector<1x32xf32>
    %295 = math.exp %294 : vector<1x32xf32>
    %cst_69 = arith.constant 1.000000e+00 : f32
    %296 = vector.broadcast %cst_69 : f32 to vector<1x32xf32>
    %297 = arith.addf %296, %295 : vector<1x32xf32>
    %298 = arith.divf %296, %297 : vector<1x32xf32>
    %299 = vector.extract_strided_slice %292 {offsets = [0, 32], sizes = [1, 32], strides = [1, 1]} : vector<1x128xf32> to vector<1x32xf32>
    %300 = arith.negf %299 : vector<1x32xf32>
    %301 = math.exp %300 : vector<1x32xf32>
    %cst_70 = arith.constant 1.000000e+00 : f32
    %302 = vector.broadcast %cst_70 : f32 to vector<1x32xf32>
    %303 = arith.addf %302, %301 : vector<1x32xf32>
    %304 = arith.divf %302, %303 : vector<1x32xf32>
    %305 = vector.extract_strided_slice %292 {offsets = [0, 64], sizes = [1, 32], strides = [1, 1]} : vector<1x128xf32> to vector<1x32xf32>
    %306 = math.tanh %305 : vector<1x32xf32>
    %307 = vector.extract_strided_slice %292 {offsets = [0, 96], sizes = [1, 32], strides = [1, 1]} : vector<1x128xf32> to vector<1x32xf32>
    %308 = arith.negf %307 : vector<1x32xf32>
    %309 = math.exp %308 : vector<1x32xf32>
    %cst_71 = arith.constant 1.000000e+00 : f32
    %310 = vector.broadcast %cst_71 : f32 to vector<1x32xf32>
    %311 = arith.addf %310, %309 : vector<1x32xf32>
    %312 = arith.divf %310, %311 : vector<1x32xf32>
    %313 = arith.mulf %304, %257 : vector<1x32xf32>
    %314 = arith.mulf %298, %306 : vector<1x32xf32>
    %315 = arith.addf %313, %314 : vector<1x32xf32>
    %316 = math.tanh %315 : vector<1x32xf32>
    %317 = arith.mulf %312, %316 : vector<1x32xf32>
    %c4_72 = arith.constant 4 : index
    %c0_73 = arith.constant 0 : index
    %318 = vector.load %arg14[%c4_72, %c0_73] : memref<8x64xf32, #tpu.memory_space<vmem>>, vector<1x32xf32>
    tpu.vector_store %arg14[%c4_72, %c0_73], %289 {strides = array<i32>} : memref<8x64xf32, #tpu.memory_space<vmem>>, vector<1x32xf32>,
    %c3_74 = arith.constant 3 : index
    %c32_75 = arith.constant 32 : index
    %319 = vector.load %arg14[%c3_74, %c32_75] : memref<8x64xf32, #tpu.memory_space<vmem>>, vector<1x32xf32>
    tpu.vector_store %arg14[%c3_74, %c32_75], %317 {strides = array<i32>} : memref<8x64xf32, #tpu.memory_space<vmem>>, vector<1x32xf32>,
    %320 = vector.extract_strided_slice %23 {offsets = [5, 0], sizes = [1, 128], strides = [1, 1]} : vector<8x256xf32> to vector<1x128xf32>
    %cst_76 = arith.constant dense<0.000000e+00> : vector<1x128xf32>
    %321 = tpu.matmul %289, %24, %cst_76 {dimension_numbers = #tpu.dot_dimension_numbers<[1], [0], [0], [1], [0, 0, 1, 1], [], []>} : vector<1x32xf32>, vector<32x128xf32>, vector<1x128xf32> -> vector<1x128xf32>
    %322 = arith.addf %320, %321 : vector<1x128xf32>
    %323 = vector.extract_strided_slice %322 {offsets = [0, 0], sizes = [1, 32], strides = [1, 1]} : vector<1x128xf32> to vector<1x32xf32>
    %324 = arith.negf %323 : vector<1x32xf32>
    %325 = math.exp %324 : vector<1x32xf32>
    %cst_77 = arith.constant 1.000000e+00 : f32
    %326 = vector.broadcast %cst_77 : f32 to vector<1x32xf32>
    %327 = arith.addf %326, %325 : vector<1x32xf32>
    %328 = arith.divf %326, %327 : vector<1x32xf32>
    %329 = vector.extract_strided_slice %322 {offsets = [0, 32], sizes = [1, 32], strides = [1, 1]} : vector<1x128xf32> to vector<1x32xf32>
    %330 = arith.negf %329 : vector<1x32xf32>
    %331 = math.exp %330 : vector<1x32xf32>
    %cst_78 = arith.constant 1.000000e+00 : f32
    %332 = vector.broadcast %cst_78 : f32 to vector<1x32xf32>
    %333 = arith.addf %332, %331 : vector<1x32xf32>
    %334 = arith.divf %332, %333 : vector<1x32xf32>
    %335 = vector.extract_strided_slice %322 {offsets = [0, 64], sizes = [1, 32], strides = [1, 1]} : vector<1x128xf32> to vector<1x32xf32>
    %336 = math.tanh %335 : vector<1x32xf32>
    %337 = vector.extract_strided_slice %322 {offsets = [0, 96], sizes = [1, 32], strides = [1, 1]} : vector<1x128xf32> to vector<1x32xf32>
    %338 = arith.negf %337 : vector<1x32xf32>
    %339 = math.exp %338 : vector<1x32xf32>
    %cst_79 = arith.constant 1.000000e+00 : f32
    %340 = vector.broadcast %cst_79 : f32 to vector<1x32xf32>
    %341 = arith.addf %340, %339 : vector<1x32xf32>
    %342 = arith.divf %340, %341 : vector<1x32xf32>
    %343 = arith.mulf %334, %287 : vector<1x32xf32>
    %344 = arith.mulf %328, %336 : vector<1x32xf32>
    %345 = arith.addf %343, %344 : vector<1x32xf32>
    %346 = math.tanh %345 : vector<1x32xf32>
    %347 = arith.mulf %342, %346 : vector<1x32xf32>
    %348 = vector.extract_strided_slice %23 {offsets = [2, 128], sizes = [1, 128], strides = [1, 1]} : vector<8x256xf32> to vector<1x128xf32>
    %cst_80 = arith.constant dense<0.000000e+00> : vector<1x128xf32>
    %349 = tpu.matmul %317, %25, %cst_80 {dimension_numbers = #tpu.dot_dimension_numbers<[1], [0], [0], [1], [0, 0, 1, 1], [], []>} : vector<1x32xf32>, vector<32x128xf32>, vector<1x128xf32> -> vector<1x128xf32>
    %350 = arith.addf %348, %349 : vector<1x128xf32>
    %351 = vector.extract_strided_slice %350 {offsets = [0, 0], sizes = [1, 32], strides = [1, 1]} : vector<1x128xf32> to vector<1x32xf32>
    %352 = arith.negf %351 : vector<1x32xf32>
    %353 = math.exp %352 : vector<1x32xf32>
    %cst_81 = arith.constant 1.000000e+00 : f32
    %354 = vector.broadcast %cst_81 : f32 to vector<1x32xf32>
    %355 = arith.addf %354, %353 : vector<1x32xf32>
    %356 = arith.divf %354, %355 : vector<1x32xf32>
    %357 = vector.extract_strided_slice %350 {offsets = [0, 32], sizes = [1, 32], strides = [1, 1]} : vector<1x128xf32> to vector<1x32xf32>
    %358 = arith.negf %357 : vector<1x32xf32>
    %359 = math.exp %358 : vector<1x32xf32>
    %cst_82 = arith.constant 1.000000e+00 : f32
    %360 = vector.broadcast %cst_82 : f32 to vector<1x32xf32>
    %361 = arith.addf %360, %359 : vector<1x32xf32>
    %362 = arith.divf %360, %361 : vector<1x32xf32>
    %363 = vector.extract_strided_slice %350 {offsets = [0, 64], sizes = [1, 32], strides = [1, 1]} : vector<1x128xf32> to vector<1x32xf32>
    %364 = math.tanh %363 : vector<1x32xf32>
    %365 = vector.extract_strided_slice %350 {offsets = [0, 96], sizes = [1, 32], strides = [1, 1]} : vector<1x128xf32> to vector<1x32xf32>
    %366 = arith.negf %365 : vector<1x32xf32>
    %367 = math.exp %366 : vector<1x32xf32>
    %cst_83 = arith.constant 1.000000e+00 : f32
    %368 = vector.broadcast %cst_83 : f32 to vector<1x32xf32>
    %369 = arith.addf %368, %367 : vector<1x32xf32>
    %370 = arith.divf %368, %369 : vector<1x32xf32>
    %371 = arith.mulf %362, %315 : vector<1x32xf32>
    %372 = arith.mulf %356, %364 : vector<1x32xf32>
    %373 = arith.addf %371, %372 : vector<1x32xf32>
    %374 = math.tanh %373 : vector<1x32xf32>
    %375 = arith.mulf %370, %374 : vector<1x32xf32>
    %c5_84 = arith.constant 5 : index
    %c0_85 = arith.constant 0 : index
    %376 = vector.load %arg14[%c5_84, %c0_85] : memref<8x64xf32, #tpu.memory_space<vmem>>, vector<1x32xf32>
    tpu.vector_store %arg14[%c5_84, %c0_85], %347 {strides = array<i32>} : memref<8x64xf32, #tpu.memory_space<vmem>>, vector<1x32xf32>,
    %c2_86 = arith.constant 2 : index
    %c32_87 = arith.constant 32 : index
    %377 = vector.load %arg14[%c2_86, %c32_87] : memref<8x64xf32, #tpu.memory_space<vmem>>, vector<1x32xf32>
    tpu.vector_store %arg14[%c2_86, %c32_87], %375 {strides = array<i32>} : memref<8x64xf32, #tpu.memory_space<vmem>>, vector<1x32xf32>,
    %378 = vector.extract_strided_slice %23 {offsets = [6, 0], sizes = [1, 128], strides = [1, 1]} : vector<8x256xf32> to vector<1x128xf32>
    %cst_88 = arith.constant dense<0.000000e+00> : vector<1x128xf32>
    %379 = tpu.matmul %347, %24, %cst_88 {dimension_numbers = #tpu.dot_dimension_numbers<[1], [0], [0], [1], [0, 0, 1, 1], [], []>} : vector<1x32xf32>, vector<32x128xf32>, vector<1x128xf32> -> vector<1x128xf32>
    %380 = arith.addf %378, %379 : vector<1x128xf32>
    %381 = vector.extract_strided_slice %380 {offsets = [0, 0], sizes = [1, 32], strides = [1, 1]} : vector<1x128xf32> to vector<1x32xf32>
    %382 = arith.negf %381 : vector<1x32xf32>
    %383 = math.exp %382 : vector<1x32xf32>
    %cst_89 = arith.constant 1.000000e+00 : f32
    %384 = vector.broadcast %cst_89 : f32 to vector<1x32xf32>
    %385 = arith.addf %384, %383 : vector<1x32xf32>
    %386 = arith.divf %384, %385 : vector<1x32xf32>
    %387 = vector.extract_strided_slice %380 {offsets = [0, 32], sizes = [1, 32], strides = [1, 1]} : vector<1x128xf32> to vector<1x32xf32>
    %388 = arith.negf %387 : vector<1x32xf32>
    %389 = math.exp %388 : vector<1x32xf32>
    %cst_90 = arith.constant 1.000000e+00 : f32
    %390 = vector.broadcast %cst_90 : f32 to vector<1x32xf32>
    %391 = arith.addf %390, %389 : vector<1x32xf32>
    %392 = arith.divf %390, %391 : vector<1x32xf32>
    %393 = vector.extract_strided_slice %380 {offsets = [0, 64], sizes = [1, 32], strides = [1, 1]} : vector<1x128xf32> to vector<1x32xf32>
    %394 = math.tanh %393 : vector<1x32xf32>
    %395 = vector.extract_strided_slice %380 {offsets = [0, 96], sizes = [1, 32], strides = [1, 1]} : vector<1x128xf32> to vector<1x32xf32>
    %396 = arith.negf %395 : vector<1x32xf32>
    %397 = math.exp %396 : vector<1x32xf32>
    %cst_91 = arith.constant 1.000000e+00 : f32
    %398 = vector.broadcast %cst_91 : f32 to vector<1x32xf32>
    %399 = arith.addf %398, %397 : vector<1x32xf32>
    %400 = arith.divf %398, %399 : vector<1x32xf32>
    %401 = arith.mulf %392, %345 : vector<1x32xf32>
    %402 = arith.mulf %386, %394 : vector<1x32xf32>
    %403 = arith.addf %401, %402 : vector<1x32xf32>
    %404 = math.tanh %403 : vector<1x32xf32>
    %405 = arith.mulf %400, %404 : vector<1x32xf32>
    %406 = vector.extract_strided_slice %23 {offsets = [1, 128], sizes = [1, 128], strides = [1, 1]} : vector<8x256xf32> to vector<1x128xf32>
    %cst_92 = arith.constant dense<0.000000e+00> : vector<1x128xf32>
    %407 = tpu.matmul %375, %25, %cst_92 {dimension_numbers = #tpu.dot_dimension_numbers<[1], [0], [0], [1], [0, 0, 1, 1], [], []>} : vector<1x32xf32>, vector<32x128xf32>, vector<1x128xf32> -> vector<1x128xf32>
    %408 = arith.addf %406, %407 : vector<1x128xf32>
    %409 = vector.extract_strided_slice %408 {offsets = [0, 0], sizes = [1, 32], strides = [1, 1]} : vector<1x128xf32> to vector<1x32xf32>
    %410 = arith.negf %409 : vector<1x32xf32>
    %411 = math.exp %410 : vector<1x32xf32>
    %cst_93 = arith.constant 1.000000e+00 : f32
    %412 = vector.broadcast %cst_93 : f32 to vector<1x32xf32>
    %413 = arith.addf %412, %411 : vector<1x32xf32>
    %414 = arith.divf %412, %413 : vector<1x32xf32>
    %415 = vector.extract_strided_slice %408 {offsets = [0, 32], sizes = [1, 32], strides = [1, 1]} : vector<1x128xf32> to vector<1x32xf32>
    %416 = arith.negf %415 : vector<1x32xf32>
    %417 = math.exp %416 : vector<1x32xf32>
    %cst_94 = arith.constant 1.000000e+00 : f32
    %418 = vector.broadcast %cst_94 : f32 to vector<1x32xf32>
    %419 = arith.addf %418, %417 : vector<1x32xf32>
    %420 = arith.divf %418, %419 : vector<1x32xf32>
    %421 = vector.extract_strided_slice %408 {offsets = [0, 64], sizes = [1, 32], strides = [1, 1]} : vector<1x128xf32> to vector<1x32xf32>
    %422 = math.tanh %421 : vector<1x32xf32>
    %423 = vector.extract_strided_slice %408 {offsets = [0, 96], sizes = [1, 32], strides = [1, 1]} : vector<1x128xf32> to vector<1x32xf32>
    %424 = arith.negf %423 : vector<1x32xf32>
    %425 = math.exp %424 : vector<1x32xf32>
    %cst_95 = arith.constant 1.000000e+00 : f32
    %426 = vector.broadcast %cst_95 : f32 to vector<1x32xf32>
    %427 = arith.addf %426, %425 : vector<1x32xf32>
    %428 = arith.divf %426, %427 : vector<1x32xf32>
    %429 = arith.mulf %420, %373 : vector<1x32xf32>
    %430 = arith.mulf %414, %422 : vector<1x32xf32>
    %431 = arith.addf %429, %430 : vector<1x32xf32>
    %432 = math.tanh %431 : vector<1x32xf32>
    %433 = arith.mulf %428, %432 : vector<1x32xf32>
    %c6_96 = arith.constant 6 : index
    %c0_97 = arith.constant 0 : index
    %434 = vector.load %arg14[%c6_96, %c0_97] : memref<8x64xf32, #tpu.memory_space<vmem>>, vector<1x32xf32>
    tpu.vector_store %arg14[%c6_96, %c0_97], %405 {strides = array<i32>} : memref<8x64xf32, #tpu.memory_space<vmem>>, vector<1x32xf32>,
    %c1_98 = arith.constant 1 : index
    %c32_99 = arith.constant 32 : index
    %435 = vector.load %arg14[%c1_98, %c32_99] : memref<8x64xf32, #tpu.memory_space<vmem>>, vector<1x32xf32>
    tpu.vector_store %arg14[%c1_98, %c32_99], %433 {strides = array<i32>} : memref<8x64xf32, #tpu.memory_space<vmem>>, vector<1x32xf32>,
    %436 = vector.extract_strided_slice %23 {offsets = [7, 0], sizes = [1, 128], strides = [1, 1]} : vector<8x256xf32> to vector<1x128xf32>
    %cst_100 = arith.constant dense<0.000000e+00> : vector<1x128xf32>
    %437 = tpu.matmul %405, %24, %cst_100 {dimension_numbers = #tpu.dot_dimension_numbers<[1], [0], [0], [1], [0, 0, 1, 1], [], []>} : vector<1x32xf32>, vector<32x128xf32>, vector<1x128xf32> -> vector<1x128xf32>
    %438 = arith.addf %436, %437 : vector<1x128xf32>
    %439 = vector.extract_strided_slice %438 {offsets = [0, 0], sizes = [1, 32], strides = [1, 1]} : vector<1x128xf32> to vector<1x32xf32>
    %440 = arith.negf %439 : vector<1x32xf32>
    %441 = math.exp %440 : vector<1x32xf32>
    %cst_101 = arith.constant 1.000000e+00 : f32
    %442 = vector.broadcast %cst_101 : f32 to vector<1x32xf32>
    %443 = arith.addf %442, %441 : vector<1x32xf32>
    %444 = arith.divf %442, %443 : vector<1x32xf32>
    %445 = vector.extract_strided_slice %438 {offsets = [0, 32], sizes = [1, 32], strides = [1, 1]} : vector<1x128xf32> to vector<1x32xf32>
    %446 = arith.negf %445 : vector<1x32xf32>
    %447 = math.exp %446 : vector<1x32xf32>
    %cst_102 = arith.constant 1.000000e+00 : f32
    %448 = vector.broadcast %cst_102 : f32 to vector<1x32xf32>
    %449 = arith.addf %448, %447 : vector<1x32xf32>
    %450 = arith.divf %448, %449 : vector<1x32xf32>
    %451 = vector.extract_strided_slice %438 {offsets = [0, 64], sizes = [1, 32], strides = [1, 1]} : vector<1x128xf32> to vector<1x32xf32>
    %452 = math.tanh %451 : vector<1x32xf32>
    %453 = vector.extract_strided_slice %438 {offsets = [0, 96], sizes = [1, 32], strides = [1, 1]} : vector<1x128xf32> to vector<1x32xf32>
    %454 = arith.negf %453 : vector<1x32xf32>
    %455 = math.exp %454 : vector<1x32xf32>
    %cst_103 = arith.constant 1.000000e+00 : f32
    %456 = vector.broadcast %cst_103 : f32 to vector<1x32xf32>
    %457 = arith.addf %456, %455 : vector<1x32xf32>
    %458 = arith.divf %456, %457 : vector<1x32xf32>
    %459 = arith.mulf %450, %403 : vector<1x32xf32>
    %460 = arith.mulf %444, %452 : vector<1x32xf32>
    %461 = arith.addf %459, %460 : vector<1x32xf32>
    %462 = math.tanh %461 : vector<1x32xf32>
    %463 = arith.mulf %458, %462 : vector<1x32xf32>
    %464 = vector.extract_strided_slice %23 {offsets = [0, 128], sizes = [1, 128], strides = [1, 1]} : vector<8x256xf32> to vector<1x128xf32>
    %cst_104 = arith.constant dense<0.000000e+00> : vector<1x128xf32>
    %465 = tpu.matmul %433, %25, %cst_104 {dimension_numbers = #tpu.dot_dimension_numbers<[1], [0], [0], [1], [0, 0, 1, 1], [], []>} : vector<1x32xf32>, vector<32x128xf32>, vector<1x128xf32> -> vector<1x128xf32>
    %466 = arith.addf %464, %465 : vector<1x128xf32>
    %467 = vector.extract_strided_slice %466 {offsets = [0, 0], sizes = [1, 32], strides = [1, 1]} : vector<1x128xf32> to vector<1x32xf32>
    %468 = arith.negf %467 : vector<1x32xf32>
    %469 = math.exp %468 : vector<1x32xf32>
    %cst_105 = arith.constant 1.000000e+00 : f32
    %470 = vector.broadcast %cst_105 : f32 to vector<1x32xf32>
    %471 = arith.addf %470, %469 : vector<1x32xf32>
    %472 = arith.divf %470, %471 : vector<1x32xf32>
    %473 = vector.extract_strided_slice %466 {offsets = [0, 32], sizes = [1, 32], strides = [1, 1]} : vector<1x128xf32> to vector<1x32xf32>
    %474 = arith.negf %473 : vector<1x32xf32>
    %475 = math.exp %474 : vector<1x32xf32>
    %cst_106 = arith.constant 1.000000e+00 : f32
    %476 = vector.broadcast %cst_106 : f32 to vector<1x32xf32>
    %477 = arith.addf %476, %475 : vector<1x32xf32>
    %478 = arith.divf %476, %477 : vector<1x32xf32>
    %479 = vector.extract_strided_slice %466 {offsets = [0, 64], sizes = [1, 32], strides = [1, 1]} : vector<1x128xf32> to vector<1x32xf32>
    %480 = math.tanh %479 : vector<1x32xf32>
    %481 = vector.extract_strided_slice %466 {offsets = [0, 96], sizes = [1, 32], strides = [1, 1]} : vector<1x128xf32> to vector<1x32xf32>
    %482 = arith.negf %481 : vector<1x32xf32>
    %483 = math.exp %482 : vector<1x32xf32>
    %cst_107 = arith.constant 1.000000e+00 : f32
    %484 = vector.broadcast %cst_107 : f32 to vector<1x32xf32>
    %485 = arith.addf %484, %483 : vector<1x32xf32>
    %486 = arith.divf %484, %485 : vector<1x32xf32>
    %487 = arith.mulf %478, %431 : vector<1x32xf32>
    %488 = arith.mulf %472, %480 : vector<1x32xf32>
    %489 = arith.addf %487, %488 : vector<1x32xf32>
    %490 = math.tanh %489 : vector<1x32xf32>
    %491 = arith.mulf %486, %490 : vector<1x32xf32>
    %c7_108 = arith.constant 7 : index
    %c0_109 = arith.constant 0 : index
    %492 = vector.load %arg14[%c7_108, %c0_109] : memref<8x64xf32, #tpu.memory_space<vmem>>, vector<1x32xf32>
    tpu.vector_store %arg14[%c7_108, %c0_109], %463 {strides = array<i32>} : memref<8x64xf32, #tpu.memory_space<vmem>>, vector<1x32xf32>,
    %c0_110 = arith.constant 0 : index
    %c32_111 = arith.constant 32 : index
    %493 = vector.load %arg14[%c0_110, %c32_111] : memref<8x64xf32, #tpu.memory_space<vmem>>, vector<1x32xf32>
    tpu.vector_store %arg14[%c0_110, %c32_111], %491 {strides = array<i32>} : memref<8x64xf32, #tpu.memory_space<vmem>>, vector<1x32xf32>,
    %c0_112 = arith.constant 0 : index
    %c0_113 = arith.constant 0 : index
    %494 = vector.load %arg14[%c0_112, %c0_113] : memref<8x64xf32, #tpu.memory_space<vmem>>, vector<8x64xf32>
    %c0_114 = arith.constant 0 : index
    %c0_115 = arith.constant 0 : index
    %495 = vector.load %arg9[%c0_114, %c0_115] : memref<64x128xf32, #tpu.memory_space<vmem>>, vector<64x128xf32>
    %cst_116 = arith.constant dense<0.000000e+00> : vector<8x128xf32>
    %496 = tpu.matmul %494, %495, %cst_116 {dimension_numbers = #tpu.dot_dimension_numbers<[1], [0], [0], [1], [0, 0, 1, 1], [], []>} : vector<8x64xf32>, vector<64x128xf32>, vector<8x128xf32> -> vector<8x128xf32>
    %c0_117 = arith.constant 0 : index
    %c0_118 = arith.constant 0 : index
    %497 = vector.load %arg10[%c0_117, %c0_118] : memref<64x128xf32, #tpu.memory_space<vmem>>, vector<64x128xf32>
    %cst_119 = arith.constant dense<0.000000e+00> : vector<8x128xf32>
    %498 = tpu.matmul %494, %497, %cst_119 {dimension_numbers = #tpu.dot_dimension_numbers<[1], [0], [0], [1], [0, 0, 1, 1], [], []>} : vector<8x64xf32>, vector<64x128xf32>, vector<8x128xf32> -> vector<8x128xf32>
    %499 = vector.shape_cast %496 : vector<8x128xf32> to vector<8x1x128xf32>
    %500 = vector.shape_cast %498 : vector<8x128xf32> to vector<1x8x128xf32>
    %501 = vector.broadcast %499 : vector<8x1x128xf32> to vector<8x8x128xf32>
    %502 = vector.broadcast %500 : vector<1x8x128xf32> to vector<8x8x128xf32>
    %503 = arith.addf %501, %502 : vector<8x8x128xf32>
    %c0_120 = arith.constant 0 : index
    %c0_121 = arith.constant 0 : index
    %504 = vector.load %arg11[%c0_120, %c0_121] : memref<1x128xf32, #tpu.memory_space<vmem>>, vector<1x128xf32>
    %505 = vector.shape_cast %504 : vector<1x128xf32> to vector<1x1x128xf32>
    %506 = vector.broadcast %505 : vector<1x1x128xf32> to vector<8x8x128xf32>
    %507 = arith.addf %503, %506 : vector<8x8x128xf32>
    %508 = math.tanh %507 : vector<8x8x128xf32>
    %c0_122 = arith.constant 0 : index
    %c0_123 = arith.constant 0 : index
    %509 = vector.load %arg12[%c0_122, %c0_123] : memref<1x128xf32, #tpu.memory_space<vmem>>, vector<1x128xf32>
    %510 = vector.shape_cast %509 : vector<1x128xf32> to vector<1x1x128xf32>
    %511 = vector.broadcast %510 : vector<1x1x128xf32> to vector<8x8x128xf32>
    %512 = arith.mulf %508, %511 : vector<8x8x128xf32>
    %cst_124 = arith.constant dense<0.000000e+00> : vector<8x8xf32>
    %513 = vector.multi_reduction <add>, %512, %cst_124 [2] : vector<8x8x128xf32> to vector<8x8xf32>
    %c0_125 = arith.constant 0 : index
    %514 = memref.load %arg0[%c0_125] : memref<1xf32, #tpu.memory_space<smem>>
    %515 = vector.broadcast %514 : f32 to vector<8x8xf32>
    %516 = arith.addf %513, %515 : vector<8x8xf32>
    %c0_126 = arith.constant 0 : index
    %c0_127 = arith.constant 0 : index
    %517 = vector.load %arg13[%c0_126, %c0_127] : memref<8x8xf32, #tpu.memory_space<vmem>>, vector<8x8xf32>
    tpu.vector_store %arg13[%c0_126, %c0_127], %516 {strides = array<i32>} : memref<8x8xf32, #tpu.memory_space<vmem>>, vector<8x8xf32>,
    return
  }
}

</mosaic_0001>

<bundles_post_ra>
// kernel: tpu_custom_call.1
= control target key start
LH: loop header
LB: loop body
LE: loop exit
PB: predicated region body
PF: predicated region fallthrough
CT: control target
= control target key end

     0   :  { %19 = vsyncpa [#allocation5], 0  ;;  %s4106_s0 = inlined_call_operand.<no memory space> [shape: f32[1], index: 0, kind: input, shape index: {}]   ;;  %s4107_s1 = inlined_call_operand.vmem [shape: s32[8,1], index: 1, kind: input, shape index: {}]   ;;  %s4108_s2 = inlined_call_operand.vmem [shape: s32[8,1], index: 2, kind: input, shape index: {}]   ;;  %s4109_s3 = inlined_call_operand.vmem [shape: f32[100,32], index: 3, kind: input, shape index: {}]   ;;  %s4110_s4 = inlined_call_operand.vmem [shape: f32[20,16], index: 4, kind: input, shape index: {}]   ;;  %s4111_s5 = inlined_call_operand.vmem [shape: f32[48,256], index: 5, kind: input, shape index: {}]   ;;  %s4112_s6 = inlined_call_operand.hbm [shape: f32[1,256], index: 6, kind: input, shape index: {}]   ;;  %s4113_s7 = inlined_call_operand.hbm [shape: f32[32,128], index: 7, kind: input, shape index: {}]   ;;  %s4114_s8 = inlined_call_operand.hbm [shape: f32[32,128], index: 8, kind: input, shape index: {}]   ;;  %s4115_s9 = inlined_call_operand.vmem [shape: f32[64,128], index: 9, kind: input, shape index: {}]   ;;  %s4116_s10 = inlined_call_operand.vmem [shape: f32[64,128], index: 10, kind: input, shape index: {}]   ;;  %s4117_s11 = inlined_call_operand.vmem [shape: f32[1,128], index: 11, kind: input, shape index: {}]   ;;  %s4118_s12 = inlined_call_operand.vmem [shape: f32[1,128], index: 12, kind: input, shape index: {}]   ;;  %s4119_s13 = inlined_call_operand.hbm [shape: f32[8,8], index: 13, kind: output, shape index: {}]  }
   0x1   :  { %20 = vsyncpa [#allocation8], 0 }
   0x2   :  { %21 = vsyncpa [#allocation6], 0  ;;  %s3439_s25 = smov [#allocation7]   ;;  %s3345_s29 = scalar_lea.hbm %s4113_s7, 512 }
   0x3   :  { %s49_s26 = sshll.u32 %s3439_s25, 4  ;;  %p3346_p0 = scmp.ne.s32.totalorder %s4113_s7, %s3345_s29  ;;  %s50_s26 = int_to_ptr.vmem [resolvable:$true] %s49_s26 }
   0x4   :  { %p3349_p1 = scmp.lt.u32.totalorder %s3345_s29, %s4113_s7 }
   0x6   :  { %p3351_p2 = pnand %p3349_p1, %p3346_p0 }
   0x8   :  { %3354 = shalt.err (!%p3351_p2)
}
   0x9   :  { %s3355_s17 = scalar_lea.vmem %s50_s26, 512  ;;  %p3360_p4 = scmp.lt.s32.totalorder %s50_s26, %s50_s26 }
   0xa   :  { %p3356_p3 = scmp.ne.s32.totalorder %s50_s26, %s3355_s17  ;;  %p3361_p5 = scmp.lt.s32.totalorder %s3355_s17, %s3355_s17 }
   0xc   :  { %p3362_p6 = por %p3361_p5, %p3360_p4 }
   0xe   :  { %p3363_p7 = pnand %p3362_p6, %p3356_p3 }
  0x10   :  { %3366 = shalt.err (!%p3363_p7)
}
  0x11   :  { %s3440_s18 = smov 128   ;;  %s3441_s19 = smov 8  }
  0x12   :  { %55 = dma.hbm_to_vmem [thread:$0]  %s4113_s7, 512, %s50_s26, [#allocation8], %s3440_s18, %s3440_s18, %s3441_s19  }
  0x13   :  { %s3442_s22 = smov [#allocation4]   ;;  %s3443_s24 = smov [#allocation9]  }
  0x14   :  { %s40_s23 = sshll.u32 %s3442_s22, 4  ;;  %s61_s25 = sshll.u32 %s3443_s24, 4  ;;  %s41_s23 = int_to_ptr.vmem [resolvable:$true] %s40_s23  ;;  %s62_s25 = int_to_ptr.vmem [resolvable:$true] %s61_s25 }
  0x15   :  { %s3367_s29 = scalar_lea.hbm %s4112_s6, 32 }
  0x16   :  { %p3368_p8 = scmp.ne.s32.totalorder %s4112_s6, %s3367_s29  ;;  %p3371_p9 = scmp.lt.u32.totalorder %s3367_s29, %s4112_s6 }
  0x18   :  { %p3373_p10 = pnand %p3371_p9, %p3368_p8 }
  0x1a   :  { %3376 = shalt.err (!%p3373_p10)
}
  0x1b   :  { %s3377_s7 = scalar_lea.vmem %s41_s23, 32  ;;  %p3382_p12 = scmp.lt.s32.totalorder %s41_s23, %s41_s23 }
  0x1c   :  { %p3378_p11 = scmp.ne.s32.totalorder %s41_s23, %s3377_s7  ;;  %p3383_p13 = scmp.lt.s32.totalorder %s3377_s7, %s3377_s7 }
  0x1e   :  { %p3384_p0 = por %p3383_p13, %p3382_p12 }
  0x20   :  { %p3385_p1 = pnand %p3384_p0, %p3378_p11 }
  0x22   :  { %3388 = shalt.err (!%p3385_p1)
}
  0x23   :  { %43 = dma.hbm_to_vmem [thread:$0]  %s4112_s6, 32, %s41_s23, [#allocation5]  }
  0x24   :  { %s3389_s22 = scalar_lea.hbm %s4114_s8, 512 }
  0x25   :  { %p3390_p2 = scmp.ne.s32.totalorder %s4114_s8, %s3389_s22  ;;  %p3393_p3 = scmp.lt.u32.totalorder %s3389_s22, %s4114_s8 }
  0x27   :  { %p3395_p4 = pnand %p3393_p3, %p3390_p2 }
  0x29   :  { %3398 = shalt.err (!%p3395_p4)
}
  0x2a   :  { %s3399_s30 = scalar_lea.vmem %s62_s25, 512  ;;  %p3404_p6 = scmp.lt.s32.totalorder %s62_s25, %s62_s25 }
  0x2b   :  { %p3400_p5 = scmp.ne.s32.totalorder %s62_s25, %s3399_s30  ;;  %p3405_p7 = scmp.lt.s32.totalorder %s3399_s30, %s3399_s30 }
  0x2d   :  { %p3406_p8 = por %p3405_p7, %p3404_p6 }
  0x2f   :  { %p3407_p9 = pnand %p3406_p8, %p3400_p5 }
  0x31   :  { %3410 = shalt.err (!%p3407_p9)
}
  0x32   :  { %67 = dma.hbm_to_vmem [thread:$0]  %s4114_s8, 512, %s62_s25, [#allocation8], %s3440_s18, %s3440_s18, %s3441_s19  }
  0x33   :  { %3433 = dma.done.wait [#allocation5], 32  }
  0x34   :  { %3434 = vsyncadd [#allocation5], 4294967264 }
  0x35   :  { %3435 = dma.done.wait [#allocation8], 1024  }
  0x36   :  { %3436 = vsyncadd [#allocation8], 4294966272  ;;  %v3444_v0 = vmov 0   ;;  %v3445_v1 = vmov 0.0|0.0   ;;  %v94_v2 = vld [vmem:[%s4108_s2] sm:$0xff]  ;;  %v102_v4 = vld [vmem:[%s4109_s3 + $0x8] sm:$0xff]  ;;  %v85_v31 = vlaneseq }
  0x37   :  { %3200 = vset.pattern.permute.xlu0 %v3444_v0  ;;  %3032 = vmatprep.subr.bf16.mxu0 %v3445_v1  ;;  %v101_v3 = vld [vmem:[%s4109_s3] sm:$0xff]  ;;  %v103_v5 = vld [vmem:[%s4109_s3 + $0x10] sm:$0xff]  ;;  %v104_v6 = vld [vmem:[%s4109_s3 + $0x18] sm:$0xff]  ;;  %vm3446_vm0 = vmmov 0   ;;  %v3447_v9 = vmov 0.0   ;;  %vm118_vm1 = vcmask 1043456  }
  0x38   :  { %3050 = vmatprep.subr.bf16.mxu1 %v3445_v1  ;;  %96 = vperm.xlu0 %3200, %v94_v2   ;;  %v87_v7 = vld [vmem:[%s4107_s1] sm:$0xff]  ;;  %v3033_v8 = vpack.c.bf16 %v102_v4, %v101_v3  ;;  %v3036_v10 = vpack.c.bf16 %v104_v6, %v103_v5  ;;  %v193_v12 = vld [vmem:[%s4110_s4 + $0x8] sm:$0xff]  ;;  %v283_v17 = vld [vmem:[%s4111_s5 + $0x58] sm:$0xff]  ;;  %v3641_v32 = vand.u32 127, %v85_v31  ;;  %vm195_vm2 = vcmask 162816   ;;  %s3449_s22 = smov 32  }
  0x39   :  { %2815 = vmatprep.mubr.msk.f32.mxu1 %vm3446_vm0, %v3447_v9  ;;  %2806 = vmatprep.mubr.msk.f32.mxu0 %vm3446_vm0, %v3447_v9  ;;  %v192_v11 = vld [vmem:[%s4110_s4] sm:$0xff]  ;;  %v106_v14 = vld [vmem:[%s4109_s3 + $0x28] sm:$0xff]  ;;  %v194_v19 = vld [vmem:[%s4110_s4 + $0x10] sm:$0xf]  ;;  %vm114_vm4 = vcmask 818176   ;;  %vm284_vm6 = vcmask 130048  }
  0x3a   :  { %3034 = vmatpush3.bf16.msra.mxu0 %v3033_v8  ;;  %v105_v13 = vld [vmem:[%s4109_s3 + $0x20] sm:$0xff]  ;;  %v3051_v15 = vpack.c.bf16 %v193_v12, %v192_v11  ;;  %v281_v16 = vld [vmem:[%s4111_s5 + $0x48] sm:$0xff]  ;;  %v107_v21 = vld [vmem:[%s4109_s3 + $0x30] sm:$0xff]  ;;  %vm359_vm7 = vcmask 261120   ;;  %vm656_vm8 = vcmask 253952   ;;  %vm662_vm9 = vcmask 523527  }
  0x3b   :  { %3035 = vmatprep.subr.bf16.mxu0 %v3445_v1  ;;  %v3039_v18 = vpack.c.bf16 %v106_v14, %v105_v13  ;;  %v3053_v20 = vpack.c.bf16 %v283_v17, %v281_v16  ;;  %v108_v22 = vld [vmem:[%s4109_s3 + $0x38] sm:$0xff]  ;;  %v109_v24 = vld [vmem:[%s4109_s3 + $0x40] sm:$0xff]  ;;  %v110_v25 = vld [vmem:[%s4109_s3 + $0x48] sm:$0xff]  ;;  %vm883_vm10 = vcmask 522502   ;;  %vm877_vm11 = vcmask 254977  }
  0x3c   :  { %89 = vperm.xlu0 %3200, %v87_v7   ;;  %3052 = vmatpush3.bf16.msra.mxu1 %v3051_v15  ;;  %v3042_v23 = vpack.c.bf16 %v108_v22, %v107_v21  ;;  %v3045_v26 = vpack.c.bf16 %v110_v25, %v109_v24  ;;  %v111_v27 = vld [vmem:[%s4109_s3 + $0x50] sm:$0xff]  ;;  %v112_v28 = vld [vmem:[%s4109_s3 + $0x58] sm:$0xff]  ;;  %v113_v30 = vld [vmem:[%s4109_s3 + $0x60] sm:$0xf]  ;;  %v3716_v7 = vshrl.u32 %v85_v31, 7  ;;  %vm1107_vm12 = vcmask 521477  }
  0x3d   :  { %2813 = vmatprep.subr.mxu1 %v3447_v9  ;;  %v3048_v29 = vpack.c.bf16 %v112_v28, %v111_v27  ;;  %v280_v33 = vld [vmem:[%s4111_s5 + $0x40] sm:$0xff]  ;;  %v282_v34 = vld [vmem:[%s4111_s5 + $0x50] sm:$0xff]  ;;  %v273_v40 = vld [vmem:[%s4111_s5 + $0x8] sm:$0xff]  ;;  %vm1101_vm13 = vcmask 256002   ;;  %vm1331_vm14 = vcmask 520452   ;;  %vm1325_vm15 = vcmask 257027  }
  0x3e   :  { %3037 = vmatpush3.bf16.msra.mxu0 %v3036_v10  ;;  %v3055_v36 = vpack.c.bf16 %v282_v34, %v280_v33  ;;  %v275_v41 = vld [vmem:[%s4111_s5 + $0x18] sm:$0xff]  ;;  %v452_v43 = vld [vmem:[#allocation9] sm:$0xff]  ;;  %v455_v47 = vld [vmem:[#allocation9 + $0x18] sm:$0xff]  ;;  %v3719_v8 = vsub.s32 0, %v3716_v7  ;;  %v442_v10 = vsub.s32 1, %v3716_v7 }
  0x3f   :  { %3038 = vmatprep.subr.bf16.mxu0 %v3445_v1  ;;  %v3057_v42 = vpack.c.bf16 %v275_v41, %v273_v40  ;;  %v453_v44 = vld [vmem:[#allocation9 + $0x8] sm:$0xff]  ;;  %v454_v46 = vld [vmem:[#allocation9 + $0x10] sm:$0xff]  ;;  %v277_v51 = vld [vmem:[%s4111_s5 + $0x28] sm:$0xff] }
  0x40   :  { %2814 = vmatpush3.msk.msra.mxu1 %vm118_vm1, %v194_v19  ;;  %v3662_v45 = vpack.c.bf16 %v453_v44, %v452_v43  ;;  %v3666_v48 = vpack.c.bf16 %v455_v47, %v454_v46  ;;  %v272_v49 = vld [vmem:[%s4111_s5] sm:$0xff]  ;;  %v274_v50 = vld [vmem:[%s4111_s5 + $0x10] sm:$0xff]  ;;  %v279_v52 = vld [vmem:[%s4111_s5 + $0x38] sm:$0xff] }
  0x41   :  { %3054 = vmatprep.subr.bf16.mxu1 %v3053_v20  ;;  %v3059_v53 = vpack.c.bf16 %v274_v50, %v272_v49  ;;  %v3061_v54 = vpack.c.bf16 %v279_v52, %v277_v51  ;;  %v276_v55 = vld [vmem:[%s4111_s5 + $0x20] sm:$0xff]  ;;  %v278_v56 = vld [vmem:[%s4111_s5 + $0x30] sm:$0xff]  ;;  %v434_v12 = vld [vmem:[#allocation4] sm:$0x3]  ;;  %s3448_s5 = smov 64  }
  0x42   :  { %3040 = vmatpush3.bf16.msra.mxu0 %v3039_v18  ;;  %v3063_v59 = vpack.c.bf16 %v278_v56, %v276_v55  ;;  %v448_v60 = vld [vmem:[#allocation7] sm:$0xff]  ;;  %v449_v61 = vld [vmem:[#allocation7 + $0x8] sm:$0xff]  ;;  %v450_v2 = vld [vmem:[#allocation7 + $0x10] sm:$0xff]  ;;  %v439_v14 = vrot.slane %v434_v12, %v3719_v8  ;;  %v443_v15 = vrot.slane %v434_v12, %v442_v10 }
  0x43   :  { %3041 = vmatprep.subr.bf16.mxu0 %v3445_v1  ;;  %v3696_v0 = vpack.c.bf16 %v449_v61, %v448_v60  ;;  %v451_v3 = vld [vmem:[#allocation7 + $0x18] sm:$0xff] }
  0x44   :  { %v3701_v4 = vpack.c.bf16 %v451_v3, %v450_v2 }
  0x46   :  { %3043 = vmatpush3.bf16.msra.mxu0 %v3042_v23 }
  0x47   :  { %3044 = vmatprep.subr.bf16.mxu0 %v3445_v1 }
  0x4a   :  { %3046 = vmatpush3.bf16.msra.mxu0 %v3045_v26 }
  0x4b   :  { %3047 = vmatprep.subr.bf16.mxu0 %v3445_v1 }
  0x4e   :  { %3049 = vmatpush3.bf16.msra.mxu0 %v3048_v29 }
  0x4f   :  { %2804 = vmatprep.subr.mxu0 %v3447_v9 }
  0x52   :  { %2805 = vmatpush3.msk.msra.mxu0 %vm118_vm1, %v113_v30  ;;  %vm1549_vm1 = vcmask 258052  }
  0x53   :  { %3071 = vmatprep.subr.bf16.mxu0 %v3445_v1 }
  0xb7   :  { %v97_v35 = vpop.permute.xlu0 %96 }
  0xb8   :  { %vm98_vm3 = vcmp.eq.s32.totalorder %v3641_v32, %v97_v35 }
  0xb9   :  { %v2623_v37 = vsel %vm98_vm3, 1.0, %v3447_v9  ;;  %vm1773_vm3 = vcmask 259077  }
  0xba   :  { %2816 = vmatmul.mubr.msk.f32.vlgmr.msra.gmra.mrb[0].mxu1 %vm195_vm2, %v2623_v37  ;;  %vm1779_vm2 = vcmask 518402  }
  0xbb   :  { %v90_v38 = vpop.permute.xlu0 %89  ;;  %3056 = vmatpush1.bf16.msra.mxu1 %v3055_v36  ;;  %352 = vmatprep.mubr.f32.mxu1 %v3447_v9 }
  0xbc   :  { %vm91_vm5 = vcmp.eq.s32.totalorder %v3641_v32, %v90_v38  ;;  %3058 = vmatprep.subr.bf16.mxu1 %v3057_v42 }
  0xbd   :  { %v2622_v39 = vsel %vm91_vm5, 1.0, %v3447_v9  ;;  %vm1997_vm5 = vcmask 260102  }
  0xbe   :  { %2807 = vmatmul.mubr.msk.f32.vlgmr.msra.gmra.mrb[0].mxu0 %vm114_vm4, %v2622_v39  ;;  %vm2003_vm4 = vcmask 517377  }
  0xbf   :  { %2837 = vmatprep.mubr.msk.f32.mxu0 %vm3446_vm0, %v3447_v9  ;;  %3073 = vmatpush3.bf16.msra.mxu0 %v3662_v45 }
  0xc0   :  { %3074 = vmatprep.subr.bf16.mxu0 %v3445_v1 }
  0xc3   :  { %3076 = vmatpush3.bf16.msra.mxu0 %v3666_v48 }
  0xc4   :  { %3083 = vmatprep.subr.bf16.mxu0 %v3445_v1 }
  0xc6   :  { %2838 = vmatmul.mubr.f32.vlgmr.msra.gmra.mrb[2].mxu0 %v3447_v9 }
  0xc7   :  { %3085 = vmatpush3.bf16.msra.mxu0 %v3662_v45  ;;  %2859 = vmatprep.mubr.msk.f32.mxu0 %vm3446_vm0, %v3447_v9 }
  0xc8   :  { %3086 = vmatprep.subr.bf16.mxu0 %v3445_v1 }
  0xcb   :  { %3088 = vmatpush3.bf16.msra.mxu0 %v3666_v48 }
  0xcc   :  { %3095 = vmatprep.subr.bf16.mxu0 %v3445_v1 }
 0x18d   :  { %v268_v57 = vpop.f32.mrb[0].mxu1 }
 0x18e   :  { %v2817_v58 = vpop.f32.mrb[1].mxu1  ;;  %2628 = vmatmul.mubr.msk.f32.vlgmr.msra.gmra.mrb[2].mxu1 %vm284_vm6, %v268_v57  ;;  %vm2218_vm6 = vcmask 261127  }
 0x18f   :  { %3060 = vmatpush1.bf16.msra.mxu1 %v3059_v53  ;;  %427 = vmatprep.mubr.f32.mxu1 %v3447_v9 }
 0x190   :  { %3062 = vmatprep.subr.bf16.mxu1 %v3061_v54 }
 0x191   :  { %v188_v62 = vpop.f32.mrb[0].mxu0 }
 0x192   :  { %v2808_v63 = vpop.f32.mrb[1].mxu0 }
 0x193   :  { %3064 = vmatpush1.bf16.msra.mxu1 %v3063_v59 }
 0x194   :  { %3065 = vmatprep.subr.bf16.mxu1 %v3445_v1 }
 0x196   :  { %2629 = vmatmul.mubr.msk.f32.vlgmr.msra.gmra.mrb[2].mxu1 %vm359_vm7, %v188_v62 }
 0x197   :  { %3067 = vmatpush3.bf16.msra.mxu1 %v3696_v0  ;;  %2826 = vmatprep.mubr.msk.f32.mxu1 %vm3446_vm0, %v3447_v9 }
 0x198   :  { %3068 = vmatprep.subr.bf16.mxu1 %v3445_v1 }
 0x199   :  { %v620_v5 = vpop.f32.mrb[2].mxu0 }
 0x19a   :  { %v2839_v6 = vpop.f32.mrb[3].mxu0  ;;  %v625_v18 = vrot.slane %v620_v5, 1 }
 0x19b   :  { %3070 = vmatpush3.bf16.msra.mxu1 %v3701_v4 }
 0x19c   :  { %3077 = vmatprep.subr.bf16.mxu1 %v3445_v1 }
 0x19e   :  { %2827 = vmatmul.mubr.f32.vlgmr.msra.gmra.mrb[4].mxu1 %v3447_v9 }
 0x19f   :  { %3079 = vmatpush3.bf16.msra.mxu1 %v3696_v0  ;;  %2848 = vmatprep.mubr.msk.f32.mxu1 %vm3446_vm0, %v3447_v9 }
 0x1a0   :  { %3080 = vmatprep.subr.bf16.mxu1 %v3445_v1 }
 0x1a3   :  { %3082 = vmatpush3.bf16.msra.mxu1 %v3701_v4 }
 0x1a4   :  { %3089 = vmatprep.subr.bf16.mxu1 %v3445_v1 }
 0x269   :  { %v429_v11 = vpop.f32.mrb[2].mxu1 }
 0x26a   :  { %v431_v13 = vpop.f32.mrb[3].mxu1  ;;  %v3723_v16 = vadd.f32 %v439_v14, %v429_v11 }
 0x26b   :  { %v3725_v17 = vadd.f32 %v443_v15, %v431_v13 }
 0x26d   :  { %v627_v22 = vadd.f32 %v625_v18, %v3725_v17 }
 0x26f   :  { %v2631_v26 = vmul.f32 -1.442695, %v627_v22 }
 0x271   :  { %v525_v19 = vpop.f32.mrb[4].mxu1 }
 0x272   :  { %v529_v20 = vadd.f32 %v525_v19, %v3723_v16  ;;  %v2828_v21 = vpop.f32.mrb[5].mxu1 }
 0x274   :  { %3201 = vtanh.f32 %v529_v20  ;;  %v2630_v25 = vmul.f32 -1.442695, %v529_v20 }
 0x275   :  { %3203 = vtanh.f32 %v627_v22 }
 0x276   :  { %3205 = vpow2.f32 %v2630_v25 }
 0x277   :  { %3207 = vpow2.f32 %v2631_v26 }
 0x27e   :  { %v3202_v23 = vpop.eup %3201 }
 0x27f   :  { %539 = vrot.lane.b32.xlu1 %v3202_v23, %s3448_s5  ;;  %v3204_v24 = vpop.eup %3203 }
 0x280   :  { %v3206_v27 = vpop.eup %3205 }
 0x281   :  { %v533_v28 = vadd.f32 1.0, %v3206_v27  ;;  %v3208_v29 = vpop.eup %3207 }
 0x282   :  { %v631_v30 = vadd.f32 1.0, %v3208_v29 }
 0x283   :  { %637 = vrot.lane.b32.xlu1 %v3204_v24, %s3448_s5  ;;  %3209 = vrcp.f32 %v533_v28 }
 0x284   :  { %3211 = vrcp.f32 %v631_v30 }
 0x28d   :  { %v3210_v31 = vpop.eup %3209 }
 0x28e   :  { %v3212_v35 = vpop.eup %3211  ;;  %v537_v38 = vmul.f32 0.0, %v3210_v31 }
 0x28f   :  { %v635_v41 = vmul.f32 0.0, %v3212_v35 }
 0x2f1   :  { %v540_v33 = vpop.permute.xlu1 %539 }
 0x2f2   :  { %v542_v34 = vmul.f32 %v3210_v31, %v540_v33 }
 0x2f4   :  { %544 = vrot.lane.b32.xlu0 %v542_v34, %s3449_s22 }
 0x2f5   :  { %v638_v36 = vpop.permute.xlu1 %637 }
 0x2f6   :  { %v640_v37 = vmul.f32 %v3212_v35, %v638_v36 }
 0x2f8   :  { %642 = vrot.lane.b32.xlu1 %v640_v37, %s3449_s22 }
 0x366   :  { %v545_v39 = vpop.permute.xlu0 %544 }
 0x367   :  { %v3733_v40 = vadd.f32 %v545_v39, %v537_v38 }
 0x369   :  { %3213 = vtanh.f32 %v3733_v40  ;;  %v748_v21 = vrot.slane %v3733_v40, 7 }
 0x36a   :  { %v643_v42 = vpop.permute.xlu1 %642 }
 0x36b   :  { %v3736_v43 = vadd.f32 %v643_v42, %v635_v41 }
 0x36d   :  { %3215 = vtanh.f32 %v3736_v43  ;;  %v854_v25 = vrot.slane %v3736_v43, 1 }
 0x373   :  { %v3214_v44 = vpop.eup %3213 }
 0x374   :  { %550 = vrot.lane.b32.xlu0 %v3214_v44, %s3448_s5 }
 0x377   :  { %v3216_v46 = vpop.eup %3215 }
 0x378   :  { %648 = vrot.lane.b32.xlu1 %v3216_v46, %s3448_s5 }
 0x3e6   :  { %v551_v47 = vpop.permute.xlu0 %550 }
 0x3e7   :  { %v553_v49 = vmul.f32 %v3210_v31, %v551_v47 }
 0x3e9   :  { %653 = vrot.lane.b32.xlu0 %v553_v49, %s3449_s22 }
 0x3ea   :  { %v649_v50 = vpop.permute.xlu1 %648 }
 0x3eb   :  { %v3742_v51 = vmul.f32 %v3212_v35, %v649_v50 }
 0x3ed   :  { %v767_v52 = vrot.slane %v3742_v51, 7 }
 0x3ef   :  { %768 = vrot.lane.b32.xlu1 %v767_v52, %s3449_s22 }
 0x45b   :  { %v654_v53 = vpop.permute.xlu0 %653 }
 0x45c   :  { %657 = vst.msk [vmem:[#allocation2] sm:$0x1] %vm656_vm8, %v654_v53  ;;  %2849 = vmatmul.mubr.msk.f32.vlgmr.msra.gmra.mrb[6].mxu1 %vm359_vm7, %v654_v53  ;;  %vm2235_vm8 = vcmask 523264  }
 0x45d   :  { %3091 = vmatpush3.bf16.msra.mxu1 %v3696_v0  ;;  %2870 = vmatprep.mubr.msk.f32.mxu1 %vm3446_vm0, %v3447_v9 }
 0x45e   :  { %3092 = vmatprep.subr.bf16.mxu1 %v3445_v1 }
 0x461   :  { %v769_v54 = vpop.permute.xlu1 %768  ;;  %3094 = vmatpush3.bf16.msra.mxu1 %v3701_v4 }
 0x462   :  { %2860 = vmatmul.mubr.msk.f32.vlgmr.msra.gmra.mrb[4].mxu0 %vm359_vm7, %v769_v54  ;;  %3101 = vmatprep.subr.bf16.mxu1 %v3445_v1 }
 0x463   :  { %3097 = vmatpush3.bf16.msra.mxu0 %v3662_v45  ;;  %2881 = vmatprep.mubr.msk.f32.mxu0 %vm3446_vm0, %v3447_v9 }
 0x464   :  { %3098 = vmatprep.subr.bf16.mxu0 %v3445_v1 }
 0x467   :  { %3100 = vmatpush3.bf16.msra.mxu0 %v3666_v48 }
 0x468   :  { %3107 = vmatprep.subr.bf16.mxu0 %v3445_v1 }
 0x52f   :  { %v732_v55 = vpop.f32.mrb[6].mxu1 }
 0x530   :  { %v737_v56 = vrot.slane %v732_v55, 7  ;;  %v2850_v57 = vpop.f32.mrb[7].mxu1 }
 0x532   :  { %v739_v58 = vadd.f32 %v737_v56, %v3723_v16 }
 0x534   :  { %3217 = vtanh.f32 %v739_v58  ;;  %v2633_v3 = vmul.f32 -1.442695, %v739_v58 }
 0x535   :  { %v838_v59 = vpop.f32.mrb[4].mxu0 }
 0x536   :  { %v843_v60 = vrot.slane %v838_v59, 2  ;;  %v2861_v61 = vpop.f32.mrb[5].mxu0 }
 0x538   :  { %v845_v62 = vadd.f32 %v843_v60, %v3725_v17 }
 0x53a   :  { %3219 = vtanh.f32 %v845_v62  ;;  %v2635_v5 = vmul.f32 -1.442695, %v845_v62 }
 0x53b   :  { %3221 = vpow2.f32 %v2633_v3 }
 0x53c   :  { %3223 = vpow2.f32 %v2635_v5 }
 0x53e   :  { %v3218_v63 = vpop.eup %3217 }
 0x53f   :  { %752 = vrot.lane.b32.xlu0 %v3218_v63, %s3448_s5 }
 0x544   :  { %v3220_v2 = vpop.eup %3219 }
 0x545   :  { %858 = vrot.lane.b32.xlu1 %v3220_v2, %s3448_s5  ;;  %v3222_v6 = vpop.eup %3221 }
 0x546   :  { %v743_v10 = vadd.f32 1.0, %v3222_v6  ;;  %v3224_v11 = vpop.eup %3223 }
 0x547   :  { %v849_v12 = vadd.f32 1.0, %v3224_v11 }
 0x548   :  { %3225 = vrcp.f32 %v743_v10 }
 0x549   :  { %3227 = vrcp.f32 %v849_v12 }
 0x552   :  { %v3226_v13 = vpop.eup %3225 }
 0x553   :  { %v3228_v18 = vpop.eup %3227  ;;  %v750_v22 = vmul.f32 %v3226_v13, %v748_v21 }
 0x554   :  { %v856_v26 = vmul.f32 %v3228_v18, %v854_v25 }
 0x5b1   :  { %v753_v14 = vpop.permute.xlu0 %752 }
 0x5b2   :  { %v755_v15 = vmul.f32 %v3226_v13, %v753_v14 }
 0x5b4   :  { %757 = vrot.lane.b32.xlu0 %v755_v15, %s3449_s22 }
 0x5b7   :  { %v859_v19 = vpop.permute.xlu1 %858 }
 0x5b8   :  { %v861_v20 = vmul.f32 %v3228_v18, %v859_v19 }
 0x5ba   :  { %863 = vrot.lane.b32.xlu1 %v861_v20, %s3449_s22 }
 0x626   :  { %v758_v23 = vpop.permute.xlu0 %757 }
 0x627   :  { %v3767_v24 = vadd.f32 %v758_v23, %v750_v22 }
 0x629   :  { %3229 = vtanh.f32 %v3767_v24  ;;  %v972_v3 = vrot.slane %v3767_v24, 7 }
 0x62c   :  { %v864_v27 = vpop.permute.xlu1 %863 }
 0x62d   :  { %v3771_v28 = vadd.f32 %v864_v27, %v856_v26 }
 0x62f   :  { %3231 = vtanh.f32 %v3771_v28  ;;  %v1078_v11 = vrot.slane %v3771_v28, 1 }
 0x633   :  { %v3230_v29 = vpop.eup %3229 }
 0x634   :  { %763 = vrot.lane.b32.xlu0 %v3230_v29, %s3448_s5 }
 0x639   :  { %v3232_v30 = vpop.eup %3231 }
 0x63a   :  { %869 = vrot.lane.b32.xlu1 %v3232_v30, %s3448_s5 }
 0x6a6   :  { %v764_v31 = vpop.permute.xlu0 %763 }
 0x6a7   :  { %v3776_v33 = vmul.f32 %v3226_v13, %v764_v31 }
 0x6a9   :  { %v885_v34 = vrot.slane %v3776_v33, 1 }
 0x6ab   :  { %886 = vrot.lane.b32.xlu0 %v885_v34, %s3449_s22 }
 0x6ac   :  { %v870_v35 = vpop.permute.xlu1 %869 }
 0x6ad   :  { %v3780_v36 = vmul.f32 %v3228_v18, %v870_v35 }
 0x6af   :  { %v991_v37 = vrot.slane %v3780_v36, 6 }
 0x6b1   :  { %992 = vrot.lane.b32.xlu1 %v991_v37, %s3449_s22 }
 0x71d   :  { %v887_v38 = vpop.permute.xlu0 %886 }
 0x71e   :  { %2871 = vmatmul.mubr.msk.f32.vlgmr.msra.gmra.mrb[8].mxu1 %vm359_vm7, %v887_v38 }
 0x71f   :  { %3103 = vmatpush3.bf16.msra.mxu1 %v3696_v0  ;;  %2892 = vmatprep.mubr.msk.f32.mxu1 %vm3446_vm0, %v3447_v9 }
 0x720   :  { %3104 = vmatprep.subr.bf16.mxu1 %v3445_v1 }
 0x723   :  { %v993_v39 = vpop.permute.xlu1 %992  ;;  %3106 = vmatpush3.bf16.msra.mxu1 %v3701_v4 }
 0x724   :  { %2882 = vmatmul.mubr.msk.f32.vlgmr.msra.gmra.mrb[6].mxu0 %vm359_vm7, %v993_v39  ;;  %3113 = vmatprep.subr.bf16.mxu1 %v3445_v1 }
 0x725   :  { %3109 = vmatpush3.bf16.msra.mxu0 %v3662_v45  ;;  %2903 = vmatprep.mubr.msk.f32.mxu0 %vm3446_vm0, %v3447_v9 }
 0x726   :  { %3110 = vmatprep.subr.bf16.mxu0 %v3445_v1 }
 0x729   :  { %3112 = vmatpush3.bf16.msra.mxu0 %v3666_v48 }
 0x72a   :  { %3119 = vmatprep.subr.bf16.mxu0 %v3445_v1 }
 0x7f1   :  { %v956_v40 = vpop.f32.mrb[8].mxu1 }
 0x7f2   :  { %v961_v41 = vrot.slane %v956_v40, 6  ;;  %v2872_v42 = vpop.f32.mrb[9].mxu1 }
 0x7f4   :  { %v963_v43 = vadd.f32 %v961_v41, %v3723_v16 }
 0x7f6   :  { %3233 = vtanh.f32 %v963_v43  ;;  %v2637_v53 = vmul.f32 -1.442695, %v963_v43 }
 0x7f7   :  { %v1062_v44 = vpop.f32.mrb[6].mxu0 }
 0x7f8   :  { %v1067_v46 = vrot.slane %v1062_v44, 3  ;;  %v2883_v47 = vpop.f32.mrb[7].mxu0 }
 0x7fa   :  { %v1069_v49 = vadd.f32 %v1067_v46, %v3725_v17 }
 0x7fc   :  { %3235 = vtanh.f32 %v1069_v49  ;;  %v2639_v54 = vmul.f32 -1.442695, %v1069_v49 }
 0x7fd   :  { %3237 = vpow2.f32 %v2637_v53 }
 0x7fe   :  { %3239 = vpow2.f32 %v2639_v54 }
 0x800   :  { %v3234_v50 = vpop.eup %3233 }
 0x801   :  { %976 = vrot.lane.b32.xlu0 %v3234_v50, %s3448_s5 }
 0x806   :  { %v3236_v52 = vpop.eup %3235 }
 0x807   :  { %1082 = vrot.lane.b32.xlu1 %v3236_v52, %s3448_s5  ;;  %v3238_v55 = vpop.eup %3237 }
 0x808   :  { %v967_v56 = vadd.f32 1.0, %v3238_v55  ;;  %v3240_v57 = vpop.eup %3239 }
 0x809   :  { %v1073_v58 = vadd.f32 1.0, %v3240_v57 }
 0x80a   :  { %3241 = vrcp.f32 %v967_v56 }
 0x80b   :  { %3243 = vrcp.f32 %v1073_v58 }
 0x814   :  { %v3242_v59 = vpop.eup %3241 }
 0x815   :  { %v3244_v62 = vpop.eup %3243  ;;  %v974_v5 = vmul.f32 %v3242_v59, %v972_v3 }
 0x816   :  { %v1080_v12 = vmul.f32 %v3244_v62, %v1078_v11 }
 0x873   :  { %v977_v60 = vpop.permute.xlu0 %976 }
 0x874   :  { %v979_v61 = vmul.f32 %v3242_v59, %v977_v60 }
 0x876   :  { %981 = vrot.lane.b32.xlu0 %v979_v61, %s3449_s22 }
 0x879   :  { %v1083_v63 = vpop.permute.xlu1 %1082 }
 0x87a   :  { %v1085_v2 = vmul.f32 %v3244_v62, %v1083_v63 }
 0x87c   :  { %1087 = vrot.lane.b32.xlu1 %v1085_v2, %s3449_s22 }
 0x8e8   :  { %v982_v6 = vpop.permute.xlu0 %981 }
 0x8e9   :  { %v3805_v10 = vadd.f32 %v982_v6, %v974_v5 }
 0x8eb   :  { %3245 = vtanh.f32 %v3805_v10  ;;  %v1196_v55 = vrot.slane %v3805_v10, 7 }
 0x8ee   :  { %v1088_v13 = vpop.permute.xlu1 %1087 }
 0x8ef   :  { %v3809_v14 = vadd.f32 %v1088_v13, %v1080_v12 }
 0x8f1   :  { %3247 = vtanh.f32 %v3809_v14 }
 0x8f5   :  { %v3246_v15 = vpop.eup %3245 }
 0x8f6   :  { %987 = vrot.lane.b32.xlu0 %v3246_v15, %s3448_s5 }
 0x8fb   :  { %v3248_v18 = vpop.eup %3247 }
 0x8fc   :  { %1093 = vrot.lane.b32.xlu1 %v3248_v18, %s3448_s5 }
 0x968   :  { %v988_v19 = vpop.permute.xlu0 %987 }
 0x969   :  { %v3814_v20 = vmul.f32 %v3242_v59, %v988_v19  ;;  %v1302_v59 = vrot.slane %v3809_v14, 1 }
 0x96b   :  { %v1109_v21 = vrot.slane %v3814_v20, 2 }
 0x96d   :  { %1110 = vrot.lane.b32.xlu0 %v1109_v21, %s3449_s22 }
 0x96e   :  { %v1094_v22 = vpop.permute.xlu1 %1093 }
 0x96f   :  { %v3818_v23 = vmul.f32 %v3244_v62, %v1094_v22 }
 0x971   :  { %v1215_v24 = vrot.slane %v3818_v23, 5 }
 0x973   :  { %1216 = vrot.lane.b32.xlu1 %v1215_v24, %s3449_s22 }
 0x9df   :  { %v1111_v25 = vpop.permute.xlu0 %1110 }
 0x9e0   :  { %2893 = vmatmul.mubr.msk.f32.vlgmr.msra.gmra.mrb[10].mxu1 %vm359_vm7, %v1111_v25 }
 0x9e1   :  { %3115 = vmatpush3.bf16.msra.mxu1 %v3696_v0  ;;  %2914 = vmatprep.mubr.msk.f32.mxu1 %vm3446_vm0, %v3447_v9 }
 0x9e2   :  { %3116 = vmatprep.subr.bf16.mxu1 %v3445_v1 }
 0x9e5   :  { %v1217_v26 = vpop.permute.xlu1 %1216  ;;  %3118 = vmatpush3.bf16.msra.mxu1 %v3701_v4 }
 0x9e6   :  { %2904 = vmatmul.mubr.msk.f32.vlgmr.msra.gmra.mrb[8].mxu0 %vm359_vm7, %v1217_v26  ;;  %3125 = vmatprep.subr.bf16.mxu1 %v3445_v1 }
 0x9e7   :  { %3121 = vmatpush3.bf16.msra.mxu0 %v3662_v45  ;;  %2925 = vmatprep.mubr.msk.f32.mxu0 %vm3446_vm0, %v3447_v9 }
 0x9e8   :  { %3122 = vmatprep.subr.bf16.mxu0 %v3445_v1 }
 0x9eb   :  { %3124 = vmatpush3.bf16.msra.mxu0 %v3666_v48 }
 0x9ec   :  { %3131 = vmatprep.subr.bf16.mxu0 %v3445_v1 }
 0xab3   :  { %v1180_v27 = vpop.f32.mrb[10].mxu1 }
 0xab4   :  { %v1185_v28 = vrot.slane %v1180_v27, 5  ;;  %v2894_v29 = vpop.f32.mrb[11].mxu1 }
 0xab6   :  { %v1187_v30 = vadd.f32 %v1185_v28, %v3723_v16 }
 0xab8   :  { %3249 = vtanh.f32 %v1187_v30  ;;  %v2641_v40 = vmul.f32 -1.442695, %v1187_v30 }
 0xab9   :  { %v1286_v31 = vpop.f32.mrb[8].mxu0 }
 0xaba   :  { %v1291_v34 = vrot.slane %v1286_v31, 4  ;;  %v2905_v35 = vpop.f32.mrb[9].mxu0 }
 0xabc   :  { %v1293_v37 = vadd.f32 %v1291_v34, %v3725_v17 }
 0xabe   :  { %3251 = vtanh.f32 %v1293_v37  ;;  %v2643_v41 = vmul.f32 -1.442695, %v1293_v37 }
 0xabf   :  { %3253 = vpow2.f32 %v2641_v40 }
 0xac0   :  { %3255 = vpow2.f32 %v2643_v41 }
 0xac2   :  { %v3250_v38 = vpop.eup %3249 }
 0xac3   :  { %1200 = vrot.lane.b32.xlu0 %v3250_v38, %s3448_s5 }
 0xac8   :  { %v3252_v39 = vpop.eup %3251 }
 0xac9   :  { %1306 = vrot.lane.b32.xlu1 %v3252_v39, %s3448_s5  ;;  %v3254_v42 = vpop.eup %3253 }
 0xaca   :  { %v1191_v43 = vadd.f32 1.0, %v3254_v42  ;;  %v3256_v44 = vpop.eup %3255 }
 0xacb   :  { %v1297_v46 = vadd.f32 1.0, %v3256_v44 }
 0xacc   :  { %3257 = vrcp.f32 %v1191_v43 }
 0xacd   :  { %3259 = vrcp.f32 %v1297_v46 }
 0xad6   :  { %v3258_v47 = vpop.eup %3257 }
 0xad7   :  { %v3260_v52 = vpop.eup %3259  ;;  %v1198_v56 = vmul.f32 %v3258_v47, %v1196_v55 }
 0xad8   :  { %v1304_v60 = vmul.f32 %v3260_v52, %v1302_v59 }
 0xb35   :  { %v1201_v49 = vpop.permute.xlu0 %1200 }
 0xb36   :  { %v1203_v50 = vmul.f32 %v3258_v47, %v1201_v49 }
 0xb38   :  { %1205 = vrot.lane.b32.xlu0 %v1203_v50, %s3449_s22 }
 0xb3b   :  { %v1307_v53 = vpop.permute.xlu1 %1306 }
 0xb3c   :  { %v1309_v54 = vmul.f32 %v3260_v52, %v1307_v53 }
 0xb3e   :  { %1311 = vrot.lane.b32.xlu1 %v1309_v54, %s3449_s22 }
 0xbaa   :  { %v1206_v57 = vpop.permute.xlu0 %1205 }
 0xbab   :  { %v3843_v58 = vadd.f32 %v1206_v57, %v1198_v56 }
 0xbad   :  { %3261 = vtanh.f32 %v3843_v58  ;;  %v1420_v44 = vrot.slane %v3843_v58, 7 }
 0xbb0   :  { %v1312_v61 = vpop.permute.xlu1 %1311 }
 0xbb1   :  { %v3847_v62 = vadd.f32 %v1312_v61, %v1304_v60 }
 0xbb3   :  { %3263 = vtanh.f32 %v3847_v62  ;;  %v1526_v50 = vrot.slane %v3847_v62, 1 }
 0xbb7   :  { %v3262_v63 = vpop.eup %3261 }
 0xbb8   :  { %1211 = vrot.lane.b32.xlu0 %v3262_v63, %s3448_s5 }
 0xbbd   :  { %v3264_v2 = vpop.eup %3263 }
 0xbbe   :  { %1317 = vrot.lane.b32.xlu1 %v3264_v2, %s3448_s5 }
 0xc2a   :  { %v1212_v3 = vpop.permute.xlu0 %1211 }
 0xc2b   :  { %v3852_v5 = vmul.f32 %v3258_v47, %v1212_v3 }
 0xc2d   :  { %v1333_v6 = vrot.slane %v3852_v5, 3 }
 0xc2f   :  { %1334 = vrot.lane.b32.xlu0 %v1333_v6, %s3449_s22 }
 0xc30   :  { %v1318_v10 = vpop.permute.xlu1 %1317 }
 0xc31   :  { %v3856_v11 = vmul.f32 %v3260_v52, %v1318_v10 }
 0xc33   :  { %v1439_v12 = vrot.slane %v3856_v11, 4 }
 0xc35   :  { %1440 = vrot.lane.b32.xlu1 %v1439_v12, %s3449_s22 }
 0xca1   :  { %v1335_v13 = vpop.permute.xlu0 %1334 }
 0xca2   :  { %2915 = vmatmul.mubr.msk.f32.vlgmr.msra.gmra.mrb[12].mxu1 %vm359_vm7, %v1335_v13 }
 0xca3   :  { %3127 = vmatpush3.bf16.msra.mxu1 %v3696_v0  ;;  %2936 = vmatprep.mubr.msk.f32.mxu1 %vm3446_vm0, %v3447_v9 }
 0xca4   :  { %3128 = vmatprep.subr.bf16.mxu1 %v3445_v1 }
 0xca7   :  { %v1441_v14 = vpop.permute.xlu1 %1440  ;;  %3130 = vmatpush3.bf16.msra.mxu1 %v3701_v4 }
 0xca8   :  { %2926 = vmatmul.mubr.msk.f32.vlgmr.msra.gmra.mrb[10].mxu0 %vm359_vm7, %v1441_v14  ;;  %3137 = vmatprep.subr.bf16.mxu1 %v3445_v1 }
 0xca9   :  { %3133 = vmatpush3.bf16.msra.mxu0 %v3662_v45  ;;  %2947 = vmatprep.mubr.msk.f32.mxu0 %vm3446_vm0, %v3447_v9 }
 0xcaa   :  { %3134 = vmatprep.subr.bf16.mxu0 %v3445_v1 }
 0xcad   :  { %3136 = vmatpush3.bf16.msra.mxu0 %v3666_v48 }
 0xcae   :  { %3143 = vmatprep.subr.bf16.mxu0 %v3445_v1 }
 0xd75   :  { %v1404_v15 = vpop.f32.mrb[12].mxu1 }
 0xd76   :  { %v1409_v18 = vrot.slane %v1404_v15, 4  ;;  %v2916_v19 = vpop.f32.mrb[13].mxu1 }
 0xd78   :  { %v1411_v21 = vadd.f32 %v1409_v18, %v3723_v16 }
 0xd7a   :  { %3265 = vtanh.f32 %v1411_v21  ;;  %v2645_v29 = vmul.f32 -1.442695, %v1411_v21 }
 0xd7b   :  { %v1510_v22 = vpop.f32.mrb[10].mxu0 }
 0xd7c   :  { %v1515_v24 = vrot.slane %v1510_v22, 5  ;;  %v2927_v25 = vpop.f32.mrb[11].mxu0 }
 0xd7e   :  { %v1517_v26 = vadd.f32 %v1515_v24, %v3725_v17 }
 0xd80   :  { %3267 = vtanh.f32 %v1517_v26  ;;  %v2647_v30 = vmul.f32 -1.442695, %v1517_v26 }
 0xd81   :  { %3269 = vpow2.f32 %v2645_v29 }
 0xd82   :  { %3271 = vpow2.f32 %v2647_v30 }
 0xd84   :  { %v3266_v27 = vpop.eup %3265 }
 0xd85   :  { %1424 = vrot.lane.b32.xlu0 %v3266_v27, %s3448_s5 }
 0xd8a   :  { %v3268_v28 = vpop.eup %3267 }
 0xd8b   :  { %1530 = vrot.lane.b32.xlu1 %v3268_v28, %s3448_s5  ;;  %v3270_v31 = vpop.eup %3269 }
 0xd8c   :  { %v1415_v34 = vadd.f32 1.0, %v3270_v31  ;;  %v3272_v35 = vpop.eup %3271 }
 0xd8d   :  { %v1521_v37 = vadd.f32 1.0, %v3272_v35 }
 0xd8e   :  { %3273 = vrcp.f32 %v1415_v34 }
 0xd8f   :  { %3275 = vrcp.f32 %v1521_v37 }
 0xd98   :  { %v3274_v38 = vpop.eup %3273 }
 0xd99   :  { %v3276_v41 = vpop.eup %3275  ;;  %v1422_v46 = vmul.f32 %v3274_v38, %v1420_v44 }
 0xd9a   :  { %v1528_v52 = vmul.f32 %v3276_v41, %v1526_v50 }
 0xdf7   :  { %v1425_v39 = vpop.permute.xlu0 %1424 }
 0xdf8   :  { %v1427_v40 = vmul.f32 %v3274_v38, %v1425_v39 }
 0xdfa   :  { %1429 = vrot.lane.b32.xlu0 %v1427_v40, %s3449_s22 }
 0xdfd   :  { %v1531_v42 = vpop.permute.xlu1 %1530 }
 0xdfe   :  { %v1533_v43 = vmul.f32 %v3276_v41, %v1531_v42 }
 0xe00   :  { %1535 = vrot.lane.b32.xlu1 %v1533_v43, %s3449_s22 }
 0xe6c   :  { %v1430_v47 = vpop.permute.xlu0 %1429 }
 0xe6d   :  { %v3881_v49 = vadd.f32 %v1430_v47, %v1422_v46 }
 0xe6f   :  { %3277 = vtanh.f32 %v3881_v49 }
 0xe72   :  { %v1536_v53 = vpop.permute.xlu1 %1535 }
 0xe73   :  { %v3885_v54 = vadd.f32 %v1536_v53, %v1528_v52 }
 0xe75   :  { %3279 = vtanh.f32 %v3885_v54  ;;  %v1750_v42 = vrot.slane %v3885_v54, 1 }
 0xe79   :  { %v3278_v55 = vpop.eup %3277 }
 0xe7a   :  { %1435 = vrot.lane.b32.xlu0 %v3278_v55, %s3448_s5 }
 0xe7f   :  { %v3280_v56 = vpop.eup %3279 }
 0xe80   :  { %1541 = vrot.lane.b32.xlu1 %v3280_v56, %s3448_s5 }
 0xeec   :  { %v1436_v57 = vpop.permute.xlu0 %1435 }
 0xeed   :  { %v3890_v58 = vmul.f32 %v3274_v38, %v1436_v57  ;;  %v1644_v38 = vrot.slane %v3881_v49, 7 }
 0xeef   :  { %v1557_v59 = vrot.slane %v3890_v58, 4 }
 0xef1   :  { %1558 = vrot.lane.b32.xlu0 %v1557_v59, %s3449_s22 }
 0xef2   :  { %v1542_v60 = vpop.permute.xlu1 %1541 }
 0xef3   :  { %v3894_v61 = vmul.f32 %v3276_v41, %v1542_v60 }
 0xef5   :  { %v1663_v62 = vrot.slane %v3894_v61, 3 }
 0xef7   :  { %1664 = vrot.lane.b32.xlu1 %v1663_v62, %s3449_s22 }
 0xf63   :  { %v1559_v63 = vpop.permute.xlu0 %1558 }
 0xf64   :  { %2937 = vmatmul.mubr.msk.f32.vlgmr.msra.gmra.mrb[14].mxu1 %vm359_vm7, %v1559_v63 }
 0xf65   :  { %3139 = vmatpush3.bf16.msra.mxu1 %v3696_v0  ;;  %2958 = vmatprep.mubr.msk.f32.mxu1 %vm3446_vm0, %v3447_v9 }
 0xf66   :  { %3140 = vmatprep.subr.bf16.mxu1 %v3445_v1 }
 0xf69   :  { %v1665_v2 = vpop.permute.xlu1 %1664  ;;  %3142 = vmatpush3.bf16.msra.mxu1 %v3701_v4 }
 0xf6a   :  { %2948 = vmatmul.mubr.msk.f32.vlgmr.msra.gmra.mrb[12].mxu0 %vm359_vm7, %v1665_v2  ;;  %3149 = vmatprep.subr.bf16.mxu1 %v3445_v1 }
 0xf6b   :  { %3145 = vmatpush3.bf16.msra.mxu0 %v3662_v45  ;;  %2969 = vmatprep.mubr.msk.f32.mxu0 %vm3446_vm0, %v3447_v9 }
 0xf6c   :  { %3146 = vmatprep.subr.bf16.mxu0 %v3445_v1 }
 0xf6f   :  { %3148 = vmatpush3.bf16.msra.mxu0 %v3666_v48 }
 0xf70   :  { %3155 = vmatprep.subr.bf16.mxu0 %v3445_v1 }
0x1037   :  { %v1628_v3 = vpop.f32.mrb[14].mxu1 }
0x1038   :  { %v1633_v6 = vrot.slane %v1628_v3, 3  ;;  %v2938_v10 = vpop.f32.mrb[15].mxu1 }
0x103a   :  { %v1635_v12 = vadd.f32 %v1633_v6, %v3723_v16 }
0x103c   :  { %3281 = vtanh.f32 %v1635_v12  ;;  %v2649_v22 = vmul.f32 -1.442695, %v1635_v12 }
0x103d   :  { %v1734_v13 = vpop.f32.mrb[12].mxu0 }
0x103e   :  { %v1739_v14 = vrot.slane %v1734_v13, 6  ;;  %v2949_v15 = vpop.f32.mrb[13].mxu0 }
0x1040   :  { %v1741_v18 = vadd.f32 %v1739_v14, %v3725_v17 }
0x1042   :  { %3283 = vtanh.f32 %v1741_v18  ;;  %v2651_v24 = vmul.f32 -1.442695, %v1741_v18 }
0x1043   :  { %3285 = vpow2.f32 %v2649_v22 }
0x1044   :  { %3287 = vpow2.f32 %v2651_v24 }
0x1046   :  { %v3282_v19 = vpop.eup %3281 }
0x1047   :  { %1648 = vrot.lane.b32.xlu0 %v3282_v19, %s3448_s5 }
0x104c   :  { %v3284_v21 = vpop.eup %3283 }
0x104d   :  { %1754 = vrot.lane.b32.xlu1 %v3284_v21, %s3448_s5  ;;  %v3286_v25 = vpop.eup %3285 }
0x104e   :  { %v1639_v26 = vadd.f32 1.0, %v3286_v25  ;;  %v3288_v27 = vpop.eup %3287 }
0x104f   :  { %v1745_v28 = vadd.f32 1.0, %v3288_v27 }
0x1050   :  { %3289 = vrcp.f32 %v1639_v26 }
0x1051   :  { %3291 = vrcp.f32 %v1745_v28 }
0x105a   :  { %v3290_v29 = vpop.eup %3289 }
0x105b   :  { %v3292_v34 = vpop.eup %3291  ;;  %v1646_v39 = vmul.f32 %v3290_v29, %v1644_v38 }
0x105c   :  { %v1752_v43 = vmul.f32 %v3292_v34, %v1750_v42 }
0x10b9   :  { %v1649_v30 = vpop.permute.xlu0 %1648 }
0x10ba   :  { %v1651_v31 = vmul.f32 %v3290_v29, %v1649_v30 }
0x10bc   :  { %1653 = vrot.lane.b32.xlu0 %v1651_v31, %s3449_s22 }
0x10bf   :  { %v1755_v35 = vpop.permute.xlu1 %1754 }
0x10c0   :  { %v1757_v37 = vmul.f32 %v3292_v34, %v1755_v35 }
0x10c2   :  { %1759 = vrot.lane.b32.xlu1 %v1757_v37, %s3449_s22 }
0x112e   :  { %v1654_v40 = vpop.permute.xlu0 %1653 }
0x112f   :  { %v3919_v41 = vadd.f32 %v1654_v40, %v1646_v39 }
0x1131   :  { %3293 = vtanh.f32 %v3919_v41  ;;  %v1868_v27 = vrot.slane %v3919_v41, 7 }
0x1134   :  { %v1760_v44 = vpop.permute.xlu1 %1759 }
0x1135   :  { %v3923_v46 = vadd.f32 %v1760_v44, %v1752_v43 }
0x1137   :  { %3295 = vtanh.f32 %v3923_v46  ;;  %v1974_v31 = vrot.slane %v3923_v46, 1 }
0x113b   :  { %v3294_v47 = vpop.eup %3293 }
0x113c   :  { %1659 = vrot.lane.b32.xlu0 %v3294_v47, %s3448_s5 }
0x1141   :  { %v3296_v50 = vpop.eup %3295 }
0x1142   :  { %1765 = vrot.lane.b32.xlu1 %v3296_v50, %s3448_s5 }
0x11ae   :  { %v1660_v49 = vpop.permute.xlu0 %1659 }
0x11af   :  { %v3928_v52 = vmul.f32 %v3290_v29, %v1660_v49 }
0x11b1   :  { %v1781_v53 = vrot.slane %v3928_v52, 5 }
0x11b3   :  { %1782 = vrot.lane.b32.xlu0 %v1781_v53, %s3449_s22 }
0x11b4   :  { %v1766_v54 = vpop.permute.xlu1 %1765 }
0x11b5   :  { %v3932_v55 = vmul.f32 %v3292_v34, %v1766_v54 }
0x11b7   :  { %v1887_v56 = vrot.slane %v3932_v55, 2 }
0x11b9   :  { %1888 = vrot.lane.b32.xlu1 %v1887_v56, %s3449_s22 }
0x1225   :  { %v1783_v57 = vpop.permute.xlu0 %1782 }
0x1226   :  { %2959 = vmatmul.mubr.msk.f32.vlgmr.msra.gmra.mrb[16].mxu1 %vm359_vm7, %v1783_v57 }
0x1227   :  { %3151 = vmatpush3.bf16.msra.mxu1 %v3696_v0  ;;  %2980 = vmatprep.mubr.msk.f32.mxu1 %vm3446_vm0, %v3447_v9 }
0x1228   :  { %3152 = vmatprep.subr.bf16.mxu1 %v3445_v1 }
0x122b   :  { %v1889_v59 = vpop.permute.xlu1 %1888  ;;  %3154 = vmatpush3.bf16.msra.mxu1 %v3701_v4 }
0x122c   :  { %2970 = vmatmul.mubr.msk.f32.vlgmr.msra.gmra.mrb[14].mxu0 %vm359_vm7, %v1889_v59  ;;  %3161 = vmatprep.subr.bf16.mxu1 %v3445_v1 }
0x122d   :  { %3157 = vmatpush3.bf16.msra.mxu0 %v3662_v45  ;;  %2991 = vmatprep.mubr.msk.f32.mxu0 %vm3446_vm0, %v3447_v9 }
0x122e   :  { %3158 = vmatprep.subr.bf16.mxu0 %v3445_v1 }
0x1231   :  { %3160 = vmatpush3.bf16.msra.mxu0 %v3666_v48 }
0x1232   :  { %3173 = vmatprep.subr.bf16.mxu0 %v3445_v1 }
0x12f9   :  { %v1852_v0 = vpop.f32.mrb[16].mxu1 }
0x12fa   :  { %v1857_v60 = vrot.slane %v1852_v0, 2  ;;  %v2960_v62 = vpop.f32.mrb[17].mxu1 }
0x12fc   :  { %v1859_v4 = vadd.f32 %v1857_v60, %v3723_v16 }
0x12fe   :  { %3297 = vtanh.f32 %v1859_v4  ;;  %v2653_v48 = vmul.f32 -1.442695, %v1859_v4 }
0x12ff   :  { %v1958_v63 = vpop.f32.mrb[14].mxu0 }
0x1300   :  { %v1963_v2 = vrot.slane %v1958_v63, 7  ;;  %v2971_v3 = vpop.f32.mrb[15].mxu0 }
0x1302   :  { %v1965_v45 = vadd.f32 %v1963_v2, %v3725_v17 }
0x1304   :  { %3299 = vtanh.f32 %v1965_v45  ;;  %v2655_v12 = vmul.f32 -1.442695, %v1965_v45 }
0x1305   :  { %3301 = vpow2.f32 %v2653_v48 }
0x1306   :  { %3303 = vpow2.f32 %v2655_v12 }
0x1308   :  { %v3298_v6 = vpop.eup %3297 }
0x1309   :  { %1872 = vrot.lane.b32.xlu0 %v3298_v6, %s3448_s5 }
0x130e   :  { %v3300_v10 = vpop.eup %3299 }
0x130f   :  { %1978 = vrot.lane.b32.xlu1 %v3300_v10, %s3448_s5  ;;  %v3302_v13 = vpop.eup %3301 }
0x1310   :  { %v1863_v14 = vadd.f32 1.0, %v3302_v13  ;;  %v3304_v15 = vpop.eup %3303 }
0x1311   :  { %v1969_v18 = vadd.f32 1.0, %v3304_v15 }
0x1312   :  { %3305 = vrcp.f32 %v1863_v14 }
0x1313   :  { %3307 = vrcp.f32 %v1969_v18 }
0x131c   :  { %v3306_v19 = vpop.eup %3305 }
0x131d   :  { %v3308_v24 = vpop.eup %3307  ;;  %v1870_v28 = vmul.f32 %v3306_v19, %v1868_v27  ;;  %v2227_v27 = vld [vmem:[%s4115_s9] sm:$0xff] }
0x131e   :  { %v1976_v34 = vmul.f32 %v3308_v24, %v1974_v31 }
0x137b   :  { %v1873_v21 = vpop.permute.xlu0 %1872 }
0x137c   :  { %v1875_v22 = vmul.f32 %v3306_v19, %v1873_v21 }
0x137e   :  { %1877 = vrot.lane.b32.xlu0 %v1875_v22, %s3449_s22 }
0x1381   :  { %v1979_v25 = vpop.permute.xlu1 %1978 }
0x1382   :  { %v1981_v26 = vmul.f32 %v3308_v24, %v1979_v25 }
0x1384   :  { %1983 = vrot.lane.b32.xlu1 %v1981_v26, %s3449_s22 }
0x13f0   :  { %v1878_v29 = vpop.permute.xlu0 %1877 }
0x13f1   :  { %v1880_v30 = vadd.f32 %v1878_v29, %v1870_v28  ;;  %v2231_v28 = vld [vmem:[%s4115_s9 + $0x20] sm:$0xff]  ;;  %v2232_v29 = vld [vmem:[%s4115_s9 + $0x28] sm:$0xff] }
0x13f2   :  { %v3168_v31 = vpack.c.bf16 %v2232_v29, %v2231_v28 }
0x13f3   :  { %3309 = vtanh.f32 %v1880_v30  ;;  %v2092_v13 = vrot.slane %v1880_v30, 7  ;;  %v2313_v30 = vld [vmem:[%s4116_s10 + $0x20] sm:$0xff] }
0x13f6   :  { %v1984_v35 = vpop.permute.xlu1 %1983 }
0x13f7   :  { %v1986_v37 = vadd.f32 %v1984_v35, %v1976_v34  ;;  %v2314_v34 = vld [vmem:[%s4116_s10 + $0x28] sm:$0xff] }
0x13f8   :  { %v3180_v35 = vpack.c.bf16 %v2314_v34, %v2313_v30 }
0x13f9   :  { %3311 = vtanh.f32 %v1986_v37  ;;  %v2195_v18 = vrot.slane %v1986_v37, 1  ;;  %v2233_v37 = vld [vmem:[%s4115_s9 + $0x30] sm:$0xff] }
0x13fd   :  { %v3310_v38 = vpop.eup %3309 }
0x13fe   :  { %1883 = vrot.lane.b32.xlu0 %v3310_v38, %s3448_s5  ;;  %v2234_v38 = vld [vmem:[%s4115_s9 + $0x38] sm:$0xff] }
0x1403   :  { %v3312_v39 = vpop.eup %3311 }
0x1404   :  { %1989 = vrot.lane.b32.xlu1 %v3312_v39, %s3448_s5  ;;  %v2315_v39 = vld [vmem:[%s4116_s10 + $0x30] sm:$0xff] }
0x1470   :  { %v1884_v40 = vpop.permute.xlu0 %1883 }
0x1471   :  { %v3960_v42 = vmul.f32 %v3306_v19, %v1884_v40  ;;  %v3171_v40 = vpack.c.bf16 %v2234_v38, %v2233_v37 }
0x1473   :  { %v2005_v41 = vrot.slane %v3960_v42, 6 }
0x1475   :  { %2006 = vrot.lane.b32.xlu0 %v2005_v41, %s3449_s22 }
0x1476   :  { %v1990_v43 = vpop.permute.xlu1 %1989 }
0x1477   :  { %v3964_v44 = vmul.f32 %v3308_v24, %v1990_v43 }
0x1479   :  { %v2111_v46 = vrot.slane %v3964_v44, 1 }
0x147b   :  { %2112 = vrot.lane.b32.xlu1 %v2111_v46, %s3449_s22 }
0x14e7   :  { %v2007_v47 = vpop.permute.xlu0 %2006 }
0x14e8   :  { %2981 = vmatmul.mubr.msk.f32.vlgmr.msra.gmra.mrb[18].mxu1 %vm359_vm7, %v2007_v47 }
0x14e9   :  { %3010 = vmatprep.mubr.msk.f32.mxu1 %vm3446_vm0, %v3447_v9 }
0x14ed   :  { %v2113_v50 = vpop.permute.xlu1 %2112 }
0x14ee   :  { %2992 = vmatmul.mubr.msk.f32.vlgmr.msra.gmra.mrb[16].mxu0 %vm359_vm7, %v2113_v50  ;;  %vm2224_vm7 = vcmask 516352  }
0x14ef   :  { %3029 = vmatprep.mubr.msk.f32.mxu0 %vm3446_vm0, %v3447_v9  ;;  %vm1555_vm0 = vcmask 519427  }
0x15bb   :  { %v2076_v49 = vpop.f32.mrb[18].mxu1 }
0x15bc   :  { %v2081_v53 = vrot.slane %v2076_v49, 1  ;;  %v2982_v54 = vpop.f32.mrb[19].mxu1 }
0x15be   :  { %v2083_v56 = vadd.f32 %v2081_v53, %v3723_v16 }
0x15c0   :  { %3313 = vtanh.f32 %v2083_v56  ;;  %v2657_v4 = vmul.f32 -1.442695, %v2083_v56 }
0x15c1   :  { %v2182_v57 = vpop.f32.mrb[16].mxu0 }
0x15c2   :  { %v2186_v59 = vadd.f32 %v2182_v57, %v3725_v17  ;;  %v2993_v0 = vpop.f32.mrb[17].mxu0 }
0x15c4   :  { %3315 = vtanh.f32 %v2186_v59  ;;  %v2659_v9 = vmul.f32 -1.442695, %v2186_v59 }
0x15c5   :  { %3317 = vpow2.f32 %v2657_v4 }
0x15c6   :  { %3319 = vpow2.f32 %v2659_v9 }
0x15ca   :  { %v3314_v60 = vpop.eup %3313 }
0x15cb   :  { %2096 = vrot.lane.b32.xlu0 %v3314_v60, %s3448_s5 }
0x15ce   :  { %v3316_v62 = vpop.eup %3315 }
0x15cf   :  { %2199 = vrot.lane.b32.xlu1 %v3316_v62, %s3448_s5  ;;  %v3318_v63 = vpop.eup %3317 }
0x15d0   :  { %v2087_v2 = vadd.f32 1.0, %v3318_v63  ;;  %v3320_v3 = vpop.eup %3319 }
0x15d1   :  { %v2190_v16 = vadd.f32 1.0, %v3320_v3 }
0x15d2   :  { %3321 = vrcp.f32 %v2087_v2 }
0x15d3   :  { %3323 = vrcp.f32 %v2190_v16  ;;  %v3450_v16 = vmov 1966171168  }
0x15dc   :  { %v3978_v45 = vpop.eup %3321 }
0x15dd   :  { %v3982_v10 = vpop.eup %3323  ;;  %v2094_v14 = vmul.f32 %v3978_v45, %v2092_v13 }
0x15de   :  { %v2197_v21 = vmul.f32 %v3982_v10, %v2195_v18 }
0x163d   :  { %v2097_v17 = vpop.permute.xlu0 %2096 }
0x163e   :  { %v2099_v6 = vmul.f32 %v3978_v45, %v2097_v17 }
0x1640   :  { %2101 = vrot.lane.b32.xlu0 %v2099_v6, %s3449_s22 }
0x1641   :  { %v2200_v48 = vpop.permute.xlu1 %2199 }
0x1642   :  { %v2202_v12 = vmul.f32 %v3982_v10, %v2200_v48 }
0x1644   :  { %2204 = vrot.lane.b32.xlu1 %v2202_v12, %s3449_s22 }
0x16b2   :  { %v2102_v15 = vpop.permute.xlu0 %2101 }
0x16b3   :  { %v2104_v19 = vadd.f32 %v2102_v15, %v2094_v14 }
0x16b5   :  { %3325 = vtanh.f32 %v2104_v19 }
0x16b6   :  { %v2205_v22 = vpop.permute.xlu1 %2204 }
0x16b7   :  { %v2207_v24 = vadd.f32 %v2205_v22, %v2197_v21 }
0x16b9   :  { %3327 = vtanh.f32 %v2207_v24 }
0x16bf   :  { %v3326_v25 = vpop.eup %3325 }
0x16c0   :  { %2107 = vrot.lane.b32.xlu0 %v3326_v25, %s3448_s5 }
0x16c3   :  { %v3328_v26 = vpop.eup %3327 }
0x16c4   :  { %659 = vrot.lane.b32.xlu0 %v3742_v51, %s3448_s5  ;;  %2210 = vrot.lane.b32.xlu1 %v3328_v26, %s3448_s5  ;;  %v2228_v51 = vld [vmem:[%s4115_s9 + $0x8] sm:$0xff] }
0x16c8   :  { %880 = vrot.lane.b32.xlu0 %v3780_v36, %s3448_s5  ;;  %874 = vrot.lane.b32.xlu1 %v3776_v33, %s3449_s22  ;;  %v2309_v36 = vld [vmem:[%s4116_s10] sm:$0xff]  ;;  %v3162_v33 = vpack.c.bf16 %v2228_v51, %v2227_v27 }
0x16ca   :  { %3163 = vmatpush3.bf16.msra.mxu1 %v3162_v33 }
0x16cb   :  { %3164 = vmatprep.subr.bf16.mxu1 %v3445_v1 }
0x16cc   :  { %1104 = vrot.lane.b32.xlu0 %v3818_v23, %s3448_s5  ;;  %1098 = vrot.lane.b32.xlu1 %v3814_v20, %s3449_s22  ;;  %v2310_v20 = vld [vmem:[%s4116_s10 + $0x8] sm:$0xff] }
0x16cd   :  { %v3174_v23 = vpack.c.bf16 %v2310_v20, %v2309_v36 }
0x16cf   :  { %3175 = vmatpush3.bf16.msra.mxu0 %v3174_v23  ;;  %v2662_v23 = vld [vmem:[%s4117_s11] ss:$0 sm:$0xff] }
0x16d0   :  { %1328 = vrot.lane.b32.xlu0 %v3856_v11, %s3448_s5  ;;  %1322 = vrot.lane.b32.xlu1 %v3852_v5, %s3449_s22  ;;  %v2229_v5 = vld [vmem:[%s4115_s9 + $0x10] sm:$0xff]  ;;  %v2230_v11 = vld [vmem:[%s4115_s9 + $0x18] sm:$0xff] }
0x16d1   :  { %3176 = vmatprep.subr.bf16.mxu0 %v3445_v1 }
0x16d4   :  { %1552 = vrot.lane.b32.xlu0 %v3894_v61, %s3448_s5  ;;  %1546 = vrot.lane.b32.xlu1 %v3890_v58, %s3449_s22  ;;  %v2311_v58 = vld [vmem:[%s4116_s10 + $0x10] sm:$0xff]  ;;  %v3165_v61 = vpack.c.bf16 %v2230_v11, %v2229_v5 }
0x16d6   :  { %3166 = vmatpush3.bf16.msra.mxu1 %v3165_v61 }
0x16d7   :  { %3167 = vmatprep.subr.bf16.mxu1 %v3445_v1 }
0x16d8   :  { %1776 = vrot.lane.b32.xlu0 %v3932_v55, %s3448_s5  ;;  %1770 = vrot.lane.b32.xlu1 %v3928_v52, %s3449_s22  ;;  %v2312_v52 = vld [vmem:[%s4116_s10 + $0x18] sm:$0xff] }
0x16d9   :  { %v3177_v55 = vpack.c.bf16 %v2312_v52, %v2311_v58 }
0x16da   :  { %3169 = vmatpush3.bf16.msra.mxu1 %v3168_v31 }
0x16db   :  { %3178 = vmatpush3.bf16.msra.mxu0 %v3177_v55  ;;  %3170 = vmatprep.subr.bf16.mxu1 %v3445_v1 }
0x16dc   :  { %2000 = vrot.lane.b32.xlu0 %v3964_v44, %s3448_s5  ;;  %1994 = vrot.lane.b32.xlu1 %v3960_v42, %s3449_s22  ;;  %v2316_v42 = vld [vmem:[%s4116_s10 + $0x38] sm:$0xff] }
0x16dd   :  { %3179 = vmatprep.subr.bf16.mxu0 %v3445_v1  ;;  %v3183_v41 = vpack.c.bf16 %v2316_v42, %v2315_v39 }
0x16de   :  { %3172 = vmatpush3.bf16.msra.mxu1 %v3171_v40 }
0x16df   :  { %3181 = vmatpush3.bf16.msra.mxu0 %v3180_v35 }
0x16e0   :  { %3182 = vmatprep.subr.bf16.mxu0 %v3445_v1 }
0x16e3   :  { %3184 = vmatpush3.bf16.msra.mxu0 %v3183_v41 }
0x1732   :  { %v2108_v43 = vpop.permute.xlu0 %2107 }
0x1733   :  { %v2110_v44 = vmul.f32 %v3978_v45, %v2108_v43  ;;  %v2390_v45 = vunpack.c.l.s4 %v3450_v16 }
0x1735   :  { %2215 = vrot.lane.b32.xlu1 %v2110_v44, %s3449_s22  ;;  %v2391_v17 = vunpack.c.0.s8 %v2390_v45 }
0x1736   :  { %v660_v46 = vpop.permute.xlu0 %659  ;;  %v2211_v47 = vpop.permute.xlu1 %2210 }
0x1737   :  { %663 = vst.msk [vmem:[#allocation2] sm:$0x80] %vm662_vm9, %v660_v46  ;;  %v2213_v50 = vmul.f32 %v3982_v10, %v2211_v47  ;;  %v2394_v6 = vsub.s32 %v2391_v17, %v3716_v7  ;;  %v2540_v17 = vstv %s4106_s0  ;;  %vm2589_vm9 = vcmask 1041409   ;;  %s3451_s0 = smov [#allocation10]  }
0x1738   :  { %s2612_s14 = sshll.u32 %s3451_s0, 4  ;;  %s2613_s14 = int_to_ptr.vmem [resolvable:$true] %s2612_s14 }
0x1739   :  { %2221 = vrot.lane.b32.xlu0 %v2213_v50, %s3448_s5  ;;  %v2663_v50 = vld [vmem:[%s4118_s12] ss:$0 sm:$0xff]  ;;  %s3411_s15 = scalar_lea.vmem %s2613_s14, 128  ;;  %p3416_p11 = scmp.lt.s32.totalorder %s2613_s14, %s2613_s14 }
0x173a   :  { %v881_v49 = vpop.permute.xlu0 %880  ;;  %v875_v53 = vpop.permute.xlu1 %874  ;;  %p3412_p10 = scmp.ne.s32.totalorder %s2613_s14, %s3411_s15  ;;  %p3417_p12 = scmp.lt.s32.totalorder %s3411_s15, %s3411_s15 }
0x173b   :  { %884 = vst.msk [vmem:[#allocation2] sm:$0x40] %vm883_vm10, %v881_v49  ;;  %vm2591_vm10 = vcmask 1042434  }
0x173c   :  { %878 = vst.msk [vmem:[#allocation2] sm:$0x2] %vm877_vm11, %v875_v53  ;;  %vm2593_vm11 = vcmask 1043459   ;;  %p3418_p13 = por %p3417_p12, %p3416_p11 }
0x173e   :  { %v1105_v1 = vpop.permute.xlu0 %1104  ;;  %v1099_v54 = vpop.permute.xlu1 %1098  ;;  %p3419_p0 = pnand %p3418_p13, %p3412_p10 }
0x173f   :  { %1108 = vst.msk [vmem:[#allocation2] sm:$0x20] %vm1107_vm12, %v1105_v1  ;;  %vm2595_vm12 = vcmask 1044484  }
0x1740   :  { %1102 = vst.msk [vmem:[#allocation2] sm:$0x4] %vm1101_vm13, %v1099_v54  ;;  %vm2597_vm13 = vcmask 1045509  }
0x1742   :  { %v1329_v56 = vpop.permute.xlu0 %1328  ;;  %v1323_v57 = vpop.permute.xlu1 %1322 }
0x1743   :  { %1332 = vst.msk [vmem:[#allocation2] sm:$0x10] %vm1331_vm14, %v1329_v56  ;;  %vm2599_vm14 = vcmask 1046534  }
0x1744   :  { %1326 = vst.msk [vmem:[#allocation2] sm:$0x8] %vm1325_vm15, %v1323_v57  ;;  %vm2601_vm15 = vcmask 1047559  }
0x1746   :  { %v1553_v59 = vpop.permute.xlu0 %1552  ;;  %v1547_v0 = vpop.permute.xlu1 %1546 }
0x1747   :  { %1556 = vst.msk [vmem:[#allocation2] sm:$0x8] %vm1555_vm0, %v1553_v59  ;;  %vm2604_vm0 = vcmask 64512  }
0x1748   :  { %1550 = vst.msk [vmem:[#allocation2] sm:$0x10] %vm1549_vm1, %v1547_v0 }
0x174a   :  { %v1777_v60 = vpop.permute.xlu0 %1776  ;;  %v1771_v62 = vpop.permute.xlu1 %1770 }
0x174b   :  { %1780 = vst.msk [vmem:[#allocation2] sm:$0x4] %vm1779_vm2, %v1777_v60 }
0x174c   :  { %1774 = vst.msk [vmem:[#allocation2] sm:$0x20] %vm1773_vm3, %v1771_v62 }
0x174e   :  { %v2001_v4 = vpop.permute.xlu0 %2000  ;;  %v1995_v9 = vpop.permute.xlu1 %1994 }
0x174f   :  { %2004 = vst.msk [vmem:[#allocation2] sm:$0x2] %vm2003_vm4, %v2001_v4 }
0x1750   :  { %1998 = vst.msk [vmem:[#allocation2] sm:$0x40] %vm1997_vm5, %v1995_v9 }
0x17a7   :  { %v2216_v63 = vpop.permute.xlu1 %2215 }
0x17a8   :  { %2219 = vst.msk [vmem:[#allocation2] sm:$0x80] %vm2218_vm6, %v2216_v63 }
0x17ab   :  { %v2222_v2 = vpop.permute.xlu0 %2221 }
0x17ac   :  { %2225 = vst.msk [vmem:[#allocation2] sm:$0x1] %vm2224_vm7, %v2222_v2 }
0x17b3   :  { %v2226_v3 = vld [vmem:[#allocation2] sm:$0xff] }
0x17b4   :  { %3011 = vmatmul.mubr.msk.f32.vlgmr.msra.gmra.mrb[20].mxu1 %vm2235_vm8, %v2226_v3  ;;  %3030 = vmatmul.mubr.msk.f32.vlgmr.msra.gmra.mrb[18].mxu0 %vm2235_vm8, %v2226_v3 }
0x1887   :  { %v2305_v10 = vpop.f32.mrb[20].mxu1  ;;  %v2383_v48 = vpop.f32.mrb[18].mxu0 }
0x1888   :  { %v2388_v12 = vcombine.high %v2305_v10, %v2305_v10  ;;  %v2395_v13 = vrot.slane %v2305_v10, %v2394_v6  ;;  %v3012_v14 = vpop.f32.mrb[21].mxu1  ;;  %v3031_v15 = vpop.f32.mrb[19].mxu0 }
0x188a   :  { %v2402_v18 = vrot.slane %v2388_v12, %v2394_v6  ;;  %v2403_v19 = vcombine.high %v2395_v13, %v2395_v13  ;;  %v2411_v21 = vrot.slane %v2395_v13, %v2394_v6 }
0x188c   :  { %v2404_v22 = vcombine.high %v2402_v18, %v2402_v18  ;;  %v2418_v24 = vrot.slane %v2402_v18, %v2394_v6  ;;  %v2425_v25 = vrot.slane %v2403_v19, %v2394_v6  ;;  %v2433_v26 = vcombine.high %v2411_v21, %v2411_v21 }
0x188d   :  { %v2440_v27 = vrot.slane %v2411_v21, %v3719_v8 }
0x188e   :  { %v2432_v51 = vrot.slane %v2404_v22, %v2394_v6  ;;  %v2434_v36 = vcombine.high %v2418_v24, %v2418_v24  ;;  %v2435_v33 = vcombine.high %v2425_v25, %v2425_v25  ;;  %v2444_v20 = vrot.slane %v2425_v25, %v3719_v8 }
0x188f   :  { %v2448_v5 = vrot.slane %v2433_v26, %v3719_v8  ;;  %v2456_v11 = vrot.slane %v2418_v24, %v3719_v8  ;;  %v2477_v58 = vadd.f32 %v2440_v27, %v2383_v48 }
0x1890   :  { %v2436_v61 = vcombine.high %v2432_v51, %v2432_v51  ;;  %v2452_v52 = vrot.slane %v2435_v33, %v3719_v8  ;;  %v2460_v55 = vrot.slane %v2432_v51, %v3719_v8  ;;  %v2464_v28 = vrot.slane %v2434_v36, %v3719_v8 }
0x1891   :  { %v2492_v29 = vadd.f32 %v2662_v23, %v2477_v58  ;;  %v2478_v30 = vadd.f32 %v2444_v20, %v2383_v48  ;;  %v2479_v31 = vadd.f32 %v2448_v5, %v2383_v48  ;;  %v2481_v34 = vadd.f32 %v2456_v11, %v2383_v48 }
0x1892   :  { %v2468_v35 = vrot.slane %v2436_v61, %v3719_v8  ;;  %v2480_v37 = vadd.f32 %v2452_v52, %v2383_v48  ;;  %v2482_v38 = vadd.f32 %v2460_v55, %v2383_v48  ;;  %v2483_v39 = vadd.f32 %v2464_v28, %v2383_v48 }
0x1893   :  { %3329 = vtanh.f32 %v2492_v29  ;;  %v2493_v40 = vadd.f32 %v2662_v23, %v2478_v30  ;;  %v2494_v42 = vadd.f32 %v2662_v23, %v2479_v31  ;;  %v2496_v46 = vadd.f32 %v2662_v23, %v2481_v34 }
0x1894   :  { %v2495_v41 = vadd.f32 %v2662_v23, %v2480_v37  ;;  %v2484_v43 = vadd.f32 %v2468_v35, %v2383_v48  ;;  %v2497_v44 = vadd.f32 %v2662_v23, %v2482_v38  ;;  %v2498_v8 = vadd.f32 %v2662_v23, %v2483_v39 }
0x1895   :  { %3331 = vtanh.f32 %v2493_v40  ;;  %v2559_v48 = vsub.s32 %v3641_v32, %v3716_v7 }
0x1896   :  { %3333 = vtanh.f32 %v2495_v41  ;;  %v2499_v47 = vadd.f32 %v2662_v23, %v2484_v43 }
0x1897   :  { %3335 = vtanh.f32 %v2494_v42 }
0x1898   :  { %3337 = vtanh.f32 %v2497_v44 }
0x1899   :  { %3339 = vtanh.f32 %v2496_v46 }
0x189a   :  { %3341 = vtanh.f32 %v2499_v47 }
0x189b   :  { %3343 = vtanh.f32 %v2498_v8 }
0x189d   :  { %v3330_v49 = vpop.eup %3329 }
0x189e   :  { %v2515_v53 = vmul.f32 %v3330_v49, %v2663_v50 }
0x189f   :  { %v3332_v1 = vpop.eup %3331 }
0x18a0   :  { %v3334_v54 = vpop.eup %3333  ;;  %2523 = vadd.xlane.f32.xlu1 %v2515_v53  ;;  %v2516_v56 = vmul.f32 %v3332_v1, %v2663_v50 }
0x18a1   :  { %v3336_v57 = vpop.eup %3335  ;;  %v2518_v59 = vmul.f32 %v3334_v54, %v2663_v50 }
0x18a2   :  { %2525 = vadd.xlane.f32.xlu0 %v2516_v56  ;;  %v3338_v0 = vpop.eup %3337  ;;  %v2517_v60 = vmul.f32 %v3336_v57, %v2663_v50 }
0x18a3   :  { %v3340_v62 = vpop.eup %3339  ;;  %v2520_v4 = vmul.f32 %v3338_v0, %v2663_v50 }
0x18a4   :  { %2529 = vadd.xlane.f32.xlu1 %v2518_v59  ;;  %v3342_v9 = vpop.eup %3341  ;;  %v2519_v63 = vmul.f32 %v3340_v62, %v2663_v50 }
0x18a5   :  { %v3344_v2 = vpop.eup %3343  ;;  %v2522_v3 = vmul.f32 %v3342_v9, %v2663_v50 }
0x18a6   :  { %2527 = vadd.xlane.f32.xlu0 %v2517_v60  ;;  %v2521_v16 = vmul.f32 %v3344_v2, %v2663_v50 }
0x18a8   :  { %2533 = vadd.xlane.f32.xlu1 %v2520_v4 }
0x18aa   :  { %2531 = vadd.xlane.f32.xlu0 %v2519_v63 }
0x18ac   :  { %2537 = vadd.xlane.f32.xlu1 %v2522_v3 }
0x18ae   :  { %2535 = vadd.xlane.f32.xlu0 %v2521_v16 }
0x192d   :  { %v2524_v45 = vpop.xlane.xlu1 %2523 }
0x192e   :  { %v2541_v12 = vadd.f32 %v2540_v17, %v2524_v45 }
0x192f   :  { %v2526_v6 = vpop.xlane.xlu0 %2525 }
0x1930   :  { %v2542_v10 = vadd.f32 %v2540_v17, %v2526_v6  ;;  %v2560_v19 = vrot.slane %v2541_v12, %v2559_v48 }
0x1931   :  { %v2530_v13 = vpop.xlane.xlu1 %2529 }
0x1932   :  { %v2564_v14 = vrot.slane %v2542_v10, %v2559_v48  ;;  %v2544_v21 = vadd.f32 %v2540_v17, %v2530_v13 }
0x1933   :  { %v2528_v15 = vpop.xlane.xlu0 %2527 }
0x1934   :  { %v2543_v18 = vadd.f32 %v2540_v17, %v2528_v15  ;;  %v2590_v25 = vsel %vm2589_vm9, %v2564_v14, %v2560_v19  ;;  %v2572_v36 = vrot.slane %v2544_v21, %v2559_v48 }
0x1935   :  { %v2534_v22 = vpop.xlane.xlu1 %2533 }
0x1936   :  { %v2568_v24 = vrot.slane %v2543_v18, %v2559_v48  ;;  %v2546_v33 = vadd.f32 %v2540_v17, %v2534_v22 }
0x1937   :  { %v2532_v26 = vpop.xlane.xlu0 %2531 }
0x1938   :  { %v2592_v27 = vsel %vm2591_vm10, %v2568_v24, %v2590_v25  ;;  %v2545_v51 = vadd.f32 %v2540_v17, %v2532_v26  ;;  %v2580_v61 = vrot.slane %v2546_v33, %v2559_v48 }
0x1939   :  { %v2538_v32 = vpop.xlane.xlu1 %2537  ;;  %v2594_v20 = vsel %vm2593_vm11, %v2572_v36, %v2592_v27 }
0x193a   :  { %v2576_v7 = vrot.slane %v2545_v51, %v2559_v48  ;;  %v2548_v23 = vadd.f32 %v2540_v17, %v2538_v32 }
0x193b   :  { %v2536_v5 = vpop.xlane.xlu0 %2535 }
0x193c   :  { %v2596_v11 = vsel %vm2595_vm12, %v2576_v7, %v2594_v20  ;;  %v2547_v58 = vadd.f32 %v2540_v17, %v2536_v5  ;;  %v2588_v55 = vrot.slane %v2548_v23, %v2559_v48 }
0x193d   :  { %v2598_v28 = vsel %vm2597_vm13, %v2580_v61, %v2596_v11 }
0x193e   :  { %v2584_v52 = vrot.slane %v2547_v58, %v2559_v48 }
0x1940   :  { %v2600_v29 = vsel %vm2599_vm14, %v2584_v52, %v2598_v28 }
0x1941   :  { %v2602_v30 = vsel %vm2601_vm15, %v2588_v55, %v2600_v29 }
0x1942   :  { %2605 = vst.msk [vmem:[#allocation10] sm:$0xff] %vm2604_vm0, %v2602_v30 }
0x1943   :  { %3422 = shalt.err (!%p3419_p0)
}
0x1944   :  { %s3423_s8 = scalar_lea.hbm %s4119_s13, 128 }
0x1945   :  { %p3424_p1 = scmp.ne.s32.totalorder %s4119_s13, %s3423_s8  ;;  %p3427_p2 = scmp.lt.u32.totalorder %s3423_s8, %s4119_s13 }
0x1947   :  { %p3429_p3 = pnand %p3427_p2, %p3424_p1 }
0x1949   :  { %3432 = shalt.err (!%p3429_p3)
}
0x194a   :  { %2615 = dma.vmem_to_hbm [thread:$0]  %s2613_s14, 128, %s4119_s13, [#allocation6]  }
0x194b   :  { %3437 = dma.done.wait [#allocation6], 128  }
0x194c   :  { %3438 = vsyncadd [#allocation6], 4294967168 }
0x194d   :  { %2619 = vsyncpa [#allocation5], 1 }
0x194e   :  { %2620 = vsyncpa [#allocation8], 1 }
0x194f   :  { %2621 = vsyncpa [#allocation6], 1 }

</bundles_post_ra>
